<compile_context>
chip_gen: v5e
topology: v5e:2x2
jax: 0.10.0
libtpu: 0.0.40
codegen_flags: <defaults>
</compile_context>

<pallas_src>
import functools
import math

import jax
import jax.numpy as jnp
from jax.experimental import pallas as pl
from jax.experimental.pallas import tpu as pltpu  # noqa: F401  (TPU backend registration)

# ----------------------------- configuration (small, synthetic) -----------------------------
HIDDEN = 32
INTERMEDIATE = 64
NUM_HEADS = 4
NUM_KV_HEADS = 2
HEAD_DIM = HIDDEN // NUM_HEADS
NUM_EXPERTS = 4
TOP_K = 2
ATTN_MULT = 0.08
MAX_ATTN_VAL = 30.0
RMS_EPS = 1e-5
ROPE_BASE = 10000.0
MAX_POSITION = 2048

QH = NUM_HEADS * HEAD_DIM        # 32
KH = NUM_KV_HEADS * HEAD_DIM     # 16
KV_GROUP = NUM_HEADS // NUM_KV_HEADS


# ----------------------------- in-kernel helpers -----------------------------
def _rms_f32(x, scale, eps):
    """RMSNorm in f32 (matches torch RMSNorm: f32 reduce, rsqrt, scale*x)."""
    xf = x.astype(jnp.float32)
    var = jnp.mean(xf * xf, axis=-1, keepdims=True)
    return scale.astype(jnp.float32) * (xf * jax.lax.rsqrt(var + eps))


# ----------------------------- the single fused DecoderLayer kernel -----------------------------
def _decoder_layer_kernel(
    x_ref,            # (T, H)   f32  flattened hidden_states (the residual)
    cos_ref,          # (T, D)   f32  RoPE cos gathered at position_ids
    sin_ref,          # (T, D)   f32
    mask_ref,         # (B, S, S) f32 additive attention mask
    wqkv_ref,         # (H, 2*QH + 2*KH + KH) bf16 = [Wq | Wq_rot | Wk | Wk_rot | Wv]
    wo_ref,           # (QH, H)  bf16
    gate_ref,         # (H, E)   bf16
    w_ref,            # (E, H, F) bf16  expert `linear`
    wv_ref,           # (E, H, F) bf16  expert `linear_v`
    w1_ref,           # (E, F, H) bf16  expert `linear_1`
    pre_attn_s_ref,   # (1, H) f32
    post_attn_s_ref,  # (1, H) f32
    pre_moe_s_ref,    # (1, H) f32
    post_moe_s_ref,   # (1, H) f32
    out_ref,          # out: (T, H)
    *,
    batch,
    seq,
    attn_mult,
    max_attn_val,
    eps,
):
    D = HEAD_DIM
    T = batch * seq

    x = x_ref[...].astype(jnp.float32)                       # (T, H) residual
    xn = _rms_f32(x, pre_attn_s_ref[...], eps)               # pre_attn_norm

    # ---- single fused MXU pass for q / rotate_half(q) / k / rotate_half(k) / v ----
    qkv = jnp.dot(xn.astype(jnp.bfloat16), wqkv_ref[...],
                  preferred_element_type=jnp.float32)        # (T, 2QH+2KH+KH) f32

    q_lin = qkv[:, 0:QH]
    q_rot = qkv[:, QH:2 * QH]
    k_lin = qkv[:, 2 * QH:2 * QH + KH]
    k_rot = qkv[:, 2 * QH + KH:2 * QH + 2 * KH]
    v = qkv[:, 2 * QH + 2 * KH:2 * QH + 2 * KH + KH]

    # ---- RoPE: q*cos + rotate_half(q)*sin (rotate_half already folded into q_rot/k_rot) ----
    cos = cos_ref[...]
    sin = sin_ref[...]
    cos_q = jnp.concatenate([cos] * NUM_HEADS, axis=-1)      # (T, QH)
    sin_q = jnp.concatenate([sin] * NUM_HEADS, axis=-1)
    cos_k = jnp.concatenate([cos] * NUM_KV_HEADS, axis=-1)   # (T, KH)
    sin_k = jnp.concatenate([sin] * NUM_KV_HEADS, axis=-1)

    q = q_lin * cos_q + q_rot * sin_q                        # (T, QH) f32
    k = k_lin * cos_k + k_rot * sin_k                        # (T, KH) f32

    inv_cap = 1.0 / max_attn_val

    # ---- attention: batched over heads (one QK^T + one P@V einsum per batch element) ----
    o_rows = []
    for b in range(batch):                                   # tiny static unroll (B=2)
        r0 = b * seq
        # (NH, S, D) head stacks; GQA: query head h reads shared kv head h // KV_GROUP
        q_b = jnp.stack(
            [q[r0:r0 + seq, h * D:(h + 1) * D] for h in range(NUM_HEADS)], axis=0)
        k_b = jnp.stack(
            [k[r0:r0 + seq, (h // KV_GROUP) * D:(h // KV_GROUP + 1) * D]
             for h in range(NUM_HEADS)], axis=0)
        v_b = jnp.stack(
            [v[r0:r0 + seq, (h // KV_GROUP) * D:(h // KV_GROUP + 1) * D]
             for h in range(NUM_HEADS)], axis=0)

        s = jnp.einsum('hqd,hkd->hqk',
                       q_b.astype(jnp.bfloat16), k_b.astype(jnp.bfloat16),
                       preferred_element_type=jnp.float32)   # (NH, S, S)
        s = s * attn_mult
        s = max_attn_val * jnp.tanh(s * inv_cap)             # tanh soft-cap to +/-30
        s = s + mask_ref[b]                                  # (S, S) broadcast over heads
        # scores <= +max_attn_val; shift by the cap so exp() <= 1 (no per-row max needed)
        p = jnp.exp(s - max_attn_val)
        p = p / jnp.sum(p, axis=-1, keepdims=True)           # exact divide

        o_b = jnp.einsum('hqk,hkd->hqd',
                         p.astype(jnp.bfloat16), v_b.astype(jnp.bfloat16),
                         preferred_element_type=jnp.float32)  # (NH, S, D)
        # merge heads back on the lane axis -> (S, QH)
        o_rows.append(jnp.concatenate([o_b[h] for h in range(NUM_HEADS)], axis=-1))

    o = jnp.concatenate(o_rows, axis=0)                      # (T, QH)
    # single o_proj matmul with a full 32-wide contraction
    attn_out = jnp.dot(o.astype(jnp.bfloat16), wo_ref[...],
                       preferred_element_type=jnp.float32)   # (T, H)

    hid = x + _rms_f32(attn_out, post_attn_s_ref[...], eps)  # residual + post_attn_norm

    # ---- MoE: router gate + softmax + top-2 routing, all in-kernel ----
    x_moe = _rms_f32(hid, pre_moe_s_ref[...], eps)           # pre_moe_norm
    x_moe_bf = x_moe.astype(jnp.bfloat16)

    logits = jnp.dot(x_moe_bf, gate_ref[...],
                     preferred_element_type=jnp.float32)     # (T, E) router logits (f32)
    lmax = jnp.max(logits, axis=-1, keepdims=True)
    el = jnp.exp(logits - lmax)
    rw = el / jnp.sum(el, axis=-1, keepdims=True)            # softmax routing weights

    # top-k (first-occurrence tie-break, like torch.topk) expanded to dense per-expert weights
    eidx = jax.lax.broadcasted_iota(jnp.int32, (T, NUM_EXPERTS), 1).astype(jnp.float32)
    w_dense = jnp.zeros_like(rw)
    rem = rw
    for _ in range(TOP_K):
        m = jnp.max(rem, axis=-1, keepdims=True)
        idx = jnp.min(jnp.where(rem >= m, eidx, float(NUM_EXPERTS)),
                      axis=-1, keepdims=True)
        sel = eidx == idx
        w_dense = w_dense + jnp.where(sel, m, 0.0)
        rem = jnp.where(sel, -1.0, rem)                      # softmax weights >= 0, so -1 excludes
    # TODO(synk): reference MoeBlock.forward is truncated after top-k routing; we implement the
    # standard Grok-1 combine (weighted sum of top_k expert outputs, weights NOT renormalized).

    # ---- experts: dense over all tokens (E=4, top_k=2 -> 2x redundant FLOPs, fine at this size)
    # TODO(synk): at real Grok-1 dims switch to scalar-prefetch token routing per expert.
    moe_acc = jnp.zeros((T, HIDDEN), jnp.float32)
    for e in range(NUM_EXPERTS):                             # static unroll, weights VMEM-resident
        h_lin = jnp.dot(x_moe_bf, w_ref[e], preferred_element_type=jnp.float32)   # (T, F)
        h_v = jnp.dot(x_moe_bf, wv_ref[e], preferred_element_type=jnp.float32)    # (T, F)
        # exact (erf-based) GELU, matching torch.nn.GELU()
        g = 0.5 * h_lin * (1.0 + jax.lax.erf(h_lin * (1.0 / math.sqrt(2.0))))
        cur = (g * h_v).astype(jnp.bfloat16)
        out_e = jnp.dot(cur, w1_ref[e], preferred_element_type=jnp.float32)        # (T, H)
        moe_acc = moe_acc + w_dense[:, e:e + 1] * out_e

    out = hid + _rms_f32(moe_acc, post_moe_s_ref[...], eps)  # residual + post_moe_norm
    out_ref[...] = out.astype(out_ref.dtype)


# ----------------------------- host-side wrapper -----------------------------
def decoder_layer_forward(pp, hidden_states, attention_mask, position_ids):
    """pp: preprocessed params (bf16 weights, fused wqkv, cached rotary tables)."""
    B, S, H = hidden_states.shape
    T = B * S

    # tiny glue: gather rotary tables at position_ids, flatten tokens / mask
    cos_t = pp["cos_cached"][position_ids].reshape(T, HEAD_DIM)
    sin_t = pp["sin_cached"][position_ids].reshape(T, HEAD_DIM)
    x2 = hidden_states.reshape(T, H)
    mask3 = attention_mask.reshape(B, S, S)

    kernel = functools.partial(
        _decoder_layer_kernel, batch=B, seq=S,
        attn_mult=ATTN_MULT, max_attn_val=MAX_ATTN_VAL, eps=RMS_EPS)

    # Single fused pallas_call, no grid: every operand (~60 KB total) is brought into VMEM
    # once as a full-array block, the layer runs in one kernel invocation on one TensorCore.
    out = pl.pallas_call(
        kernel,
        out_shape=jax.ShapeDtypeStruct((T, H), hidden_states.dtype),
    )(x2, cos_t, sin_t, mask3,
      pp["wqkv"], pp["wo"], pp["gate"], pp["w"], pp["wv"], pp["w1"],
      pp["pre_attn_scale"], pp["post_attn_scale"],
      pp["pre_moe_scale"], pp["post_moe_scale"])

    return out.reshape(B, S, H)


# ----------------------------- one-time parameter preprocessing -----------------------------
def rotary_cos_sin(seq_len, dim, base=ROPE_BASE, dtype=jnp.float32):
    inv_freq = 1.0 / (base ** (jnp.arange(0, dim, 2, dtype=jnp.float32) / dim))
    t = jnp.arange(seq_len, dtype=jnp.float32)
    freqs = jnp.outer(t, inv_freq)
    emb = jnp.concatenate([freqs, freqs], axis=-1)
    return jnp.cos(emb).astype(dtype), jnp.sin(emb).astype(dtype)


def _rotate_half_cols(w, n_heads):
    """Permute/negate projection columns so that x @ w_rot == rotate_half(x @ w) per head."""
    h_in = w.shape[0]
    w3 = w.reshape(h_in, n_heads, HEAD_DIM)
    half = HEAD_DIM // 2
    w_rot = jnp.concatenate([-w3[..., half:], w3[..., :half]], axis=-1)
    return w_rot.reshape(h_in, n_heads * HEAD_DIM)


def prepare_params(p):
    """Hoisted weight preprocessing: fused/rotated QKV weights, bf16 casts, rotary tables."""
    wqkv = jnp.concatenate(
        [p["q_proj"], _rotate_half_cols(p["q_proj"], NUM_HEADS),
         p["k_proj"], _rotate_half_cols(p["k_proj"], NUM_KV_HEADS),
         p["v_proj"]], axis=1)
    cos, sin = rotary_cos_sin(MAX_POSITION, HEAD_DIM)
    return {
        "wqkv": wqkv.astype(jnp.bfloat16),
        "wo": p["o_proj"].astype(jnp.bfloat16),
        "gate": p["gate"].astype(jnp.bfloat16),
        "w": p["w"].astype(jnp.bfloat16),
        "wv": p["wv"].astype(jnp.bfloat16),
        "w1": p["w1"].astype(jnp.bfloat16),
        "pre_attn_scale": p["pre_attn_scale"].reshape(1, HIDDEN).astype(jnp.float32),
        "post_attn_scale": p["post_attn_scale"].reshape(1, HIDDEN).astype(jnp.float32),
        "pre_moe_scale": p["pre_moe_scale"].reshape(1, HIDDEN).astype(jnp.float32),
        "post_moe_scale": p["post_moe_scale"].reshape(1, HIDDEN).astype(jnp.float32),
        "cos_cached": cos,
        "sin_cached": sin,
    }


# ----------------------------- deterministic parameter init -----------------------------
def init_params(key):
    keys = jax.random.split(key, 12)

    def lin(k, din, dout, scale=0.05):
        return jax.random.normal(k, (din, dout), jnp.float32) * scale

    p = {}
    p["q_proj"] = lin(keys[0], HIDDEN, NUM_HEADS * HEAD_DIM)
    p["k_proj"] = lin(keys[1], HIDDEN, NUM_KV_HEADS * HEAD_DIM)
    p["v_proj"] = lin(keys[2], HIDDEN, NUM_KV_HEADS * HEAD_DIM)
    p["o_proj"] = lin(keys[3], NUM_HEADS * HEAD_DIM, HIDDEN)
    p["gate"] = lin(keys[4], HIDDEN, NUM_EXPERTS)
    p["w"] = jax.random.normal(keys[5], (NUM_EXPERTS, HIDDEN, INTERMEDIATE), jnp.float32) * 0.05
    p["wv"] = jax.random.normal(keys[6], (NUM_EXPERTS, HIDDEN, INTERMEDIATE), jnp.float32) * 0.05
    p["w1"] = jax.random.normal(keys[7], (NUM_EXPERTS, INTERMEDIATE, HIDDEN), jnp.float32) * 0.05
    # NOTE: the PyTorch RMSNorm initializes scale to zeros; we use non-degenerate
    # deterministic values so the synthetic forward pass is non-trivial.
    p["pre_attn_scale"] = jax.random.normal(keys[8], (HIDDEN,), jnp.float32) * 0.1 + 1.0
    p["post_attn_scale"] = jax.random.normal(keys[9], (HIDDEN,), jnp.float32) * 0.1 + 1.0
    p["pre_moe_scale"] = jax.random.normal(keys[10], (HIDDEN,), jnp.float32) * 0.1 + 1.0
    p["post_moe_scale"] = jax.random.normal(keys[11], (HIDDEN,), jnp.float32) * 0.1 + 1.0
    return p


if __name__ == "__main__":
    key = jax.random.PRNGKey(0)
    pkey, xkey = jax.random.split(key)
    params = init_params(pkey)
    pp = prepare_params(params)          # one-time: fused wqkv, bf16 casts, rotary tables

    B, S = 2, 8
    x = jax.random.normal(xkey, (B, S, HIDDEN), jnp.float32)
    position_ids = jnp.broadcast_to(jnp.arange(S, dtype=jnp.int32)[None, :], (B, S))

    # additive causal attention mask of shape (B, 1, S, S)
    neg = jnp.finfo(jnp.float32).min
    causal = jnp.tril(jnp.ones((S, S), dtype=bool))
    mask = jnp.where(causal, 0.0, neg).astype(jnp.float32)[None, None, :, :]
    mask = jnp.broadcast_to(mask, (B, 1, S, S))

    fwd = jax.jit(decoder_layer_forward)
    out = fwd(pp, x, mask, position_ids)
    out = jax.block_until_ready(out)
    assert out.shape == (B, S, HIDDEN)
    assert bool(jnp.all(jnp.isfinite(out)))
    print("KERNEL_OK")
</pallas_src>

<mosaic_0001>
module attributes {stable_mosaic.version = 11 : i64} {
  func.func @_decoder_layer_kernel(%arg0: memref<16x32xf32, #tpu.memory_space<vmem>>, %arg1: memref<16x8xf32, #tpu.memory_space<vmem>>, %arg2: memref<16x8xf32, #tpu.memory_space<vmem>>, %arg3: memref<2x8x8xf32, #tpu.memory_space<vmem>>, %arg4: memref<32x112xbf16, #tpu.memory_space<vmem>>, %arg5: memref<32x32xbf16, #tpu.memory_space<vmem>>, %arg6: memref<32x4xbf16, #tpu.memory_space<vmem>>, %arg7: memref<4x32x64xbf16, #tpu.memory_space<vmem>>, %arg8: memref<4x32x64xbf16, #tpu.memory_space<vmem>>, %arg9: memref<4x64x32xbf16, #tpu.memory_space<vmem>>, %arg10: memref<1x32xf32, #tpu.memory_space<vmem>>, %arg11: memref<1x32xf32, #tpu.memory_space<vmem>>, %arg12: memref<1x32xf32, #tpu.memory_space<vmem>>, %arg13: memref<1x32xf32, #tpu.memory_space<vmem>>, %arg14: memref<16x32xf32, #tpu.memory_space<vmem>>) attributes {dimension_semantics = [], scalar_prefetch = 0 : i64, scratch_operands = 0 : i64, tpu.core_type = #tpu.core_type<tc>} {
    %c0 = arith.constant 0 : index
    %c0_0 = arith.constant 0 : index
    %0 = vector.load %arg0[%c0, %c0_0] : memref<16x32xf32, #tpu.memory_space<vmem>>, vector<16x32xf32>
    %c0_1 = arith.constant 0 : index
    %c0_2 = arith.constant 0 : index
    %1 = vector.load %arg10[%c0_1, %c0_2] : memref<1x32xf32, #tpu.memory_space<vmem>>, vector<1x32xf32>
    %2 = arith.mulf %0, %0 : vector<16x32xf32>
    %cst = arith.constant dense<0.000000e+00> : vector<16xf32>
    %3 = vector.multi_reduction <add>, %2, %cst [1] : vector<16x32xf32> to vector<16xf32>
    %4 = vector.shape_cast %3 : vector<16xf32> to vector<16x1xf32>
    %cst_3 = arith.constant 3.200000e+01 : f32
    %5 = vector.broadcast %cst_3 : f32 to vector<16x1xf32>
    %6 = arith.divf %4, %5 : vector<16x1xf32>
    %cst_4 = arith.constant 9.99999974E-6 : f32
    %7 = vector.broadcast %cst_4 : f32 to vector<16x1xf32>
    %8 = arith.addf %6, %7 : vector<16x1xf32>
    %9 = math.rsqrt %8 : vector<16x1xf32>
    %10 = vector.broadcast %9 : vector<16x1xf32> to vector<16x32xf32>
    %11 = arith.mulf %0, %10 : vector<16x32xf32>
    %12 = vector.broadcast %1 : vector<1x32xf32> to vector<16x32xf32>
    %13 = arith.mulf %12, %11 : vector<16x32xf32>
    %14 = arith.truncf %13 : vector<16x32xf32> to vector<16x32xbf16>
    %c0_5 = arith.constant 0 : index
    %c0_6 = arith.constant 0 : index
    %15 = vector.load %arg4[%c0_5, %c0_6] : memref<32x112xbf16, #tpu.memory_space<vmem>>, vector<32x112xbf16>
    %cst_7 = arith.constant dense<0.000000e+00> : vector<16x112xf32>
    %16 = tpu.matmul %14, %15, %cst_7 {dimension_numbers = #tpu.dot_dimension_numbers<[1], [0], [0], [1], [0, 0, 1, 1], [], []>} : vector<16x32xbf16>, vector<32x112xbf16>, vector<16x112xf32> -> vector<16x112xf32>
    %17 = vector.extract_strided_slice %16 {offsets = [0, 0], sizes = [16, 32], strides = [1, 1]} : vector<16x112xf32> to vector<16x32xf32>
    %18 = vector.extract_strided_slice %16 {offsets = [0, 32], sizes = [16, 32], strides = [1, 1]} : vector<16x112xf32> to vector<16x32xf32>
    %19 = vector.extract_strided_slice %16 {offsets = [0, 64], sizes = [16, 16], strides = [1, 1]} : vector<16x112xf32> to vector<16x16xf32>
    %20 = vector.extract_strided_slice %16 {offsets = [0, 80], sizes = [16, 16], strides = [1, 1]} : vector<16x112xf32> to vector<16x16xf32>
    %21 = vector.extract_strided_slice %16 {offsets = [0, 96], sizes = [16, 16], strides = [1, 1]} : vector<16x112xf32> to vector<16x16xf32>
    %c0_8 = arith.constant 0 : index
    %c0_9 = arith.constant 0 : index
    %22 = vector.load %arg1[%c0_8, %c0_9] : memref<16x8xf32, #tpu.memory_space<vmem>>, vector<16x8xf32>
    %c0_10 = arith.constant 0 : index
    %c0_11 = arith.constant 0 : index
    %23 = vector.load %arg2[%c0_10, %c0_11] : memref<16x8xf32, #tpu.memory_space<vmem>>, vector<16x8xf32>
    %24 = tpu.concatenate %22, %22, %22, %22 in 1 : vector<16x8xf32>, vector<16x8xf32>, vector<16x8xf32>, vector<16x8xf32> -> vector<16x32xf32>
    %25 = tpu.concatenate %23, %23, %23, %23 in 1 : vector<16x8xf32>, vector<16x8xf32>, vector<16x8xf32>, vector<16x8xf32> -> vector<16x32xf32>
    %26 = tpu.concatenate %22, %22 in 1 : vector<16x8xf32>, vector<16x8xf32> -> vector<16x16xf32>
    %27 = tpu.concatenate %23, %23 in 1 : vector<16x8xf32>, vector<16x8xf32> -> vector<16x16xf32>
    %28 = arith.mulf %17, %24 : vector<16x32xf32>
    %29 = arith.mulf %18, %25 : vector<16x32xf32>
    %30 = arith.addf %28, %29 : vector<16x32xf32>
    %31 = arith.mulf %19, %26 : vector<16x16xf32>
    %32 = arith.mulf %20, %27 : vector<16x16xf32>
    %33 = arith.addf %31, %32 : vector<16x16xf32>
    %34 = vector.extract_strided_slice %30 {offsets = [0, 0], sizes = [8, 8], strides = [1, 1]} : vector<16x32xf32> to vector<8x8xf32>
    %35 = vector.extract_strided_slice %30 {offsets = [0, 8], sizes = [8, 8], strides = [1, 1]} : vector<16x32xf32> to vector<8x8xf32>
    %36 = vector.extract_strided_slice %30 {offsets = [0, 16], sizes = [8, 8], strides = [1, 1]} : vector<16x32xf32> to vector<8x8xf32>
    %37 = vector.extract_strided_slice %30 {offsets = [0, 24], sizes = [8, 8], strides = [1, 1]} : vector<16x32xf32> to vector<8x8xf32>
    %38 = vector.shape_cast %34 : vector<8x8xf32> to vector<1x8x8xf32>
    %39 = vector.shape_cast %35 : vector<8x8xf32> to vector<1x8x8xf32>
    %40 = vector.shape_cast %36 : vector<8x8xf32> to vector<1x8x8xf32>
    %41 = vector.shape_cast %37 : vector<8x8xf32> to vector<1x8x8xf32>
    %42 = tpu.concatenate %38, %39, %40, %41 in 0 : vector<1x8x8xf32>, vector<1x8x8xf32>, vector<1x8x8xf32>, vector<1x8x8xf32> -> vector<4x8x8xf32>
    %43 = vector.extract_strided_slice %33 {offsets = [0, 0], sizes = [8, 8], strides = [1, 1]} : vector<16x16xf32> to vector<8x8xf32>
    %44 = vector.extract_strided_slice %33 {offsets = [0, 0], sizes = [8, 8], strides = [1, 1]} : vector<16x16xf32> to vector<8x8xf32>
    %45 = vector.extract_strided_slice %33 {offsets = [0, 8], sizes = [8, 8], strides = [1, 1]} : vector<16x16xf32> to vector<8x8xf32>
    %46 = vector.extract_strided_slice %33 {offsets = [0, 8], sizes = [8, 8], strides = [1, 1]} : vector<16x16xf32> to vector<8x8xf32>
    %47 = vector.shape_cast %43 : vector<8x8xf32> to vector<1x8x8xf32>
    %48 = vector.shape_cast %44 : vector<8x8xf32> to vector<1x8x8xf32>
    %49 = vector.shape_cast %45 : vector<8x8xf32> to vector<1x8x8xf32>
    %50 = vector.shape_cast %46 : vector<8x8xf32> to vector<1x8x8xf32>
    %51 = tpu.concatenate %47, %48, %49, %50 in 0 : vector<1x8x8xf32>, vector<1x8x8xf32>, vector<1x8x8xf32>, vector<1x8x8xf32> -> vector<4x8x8xf32>
    %52 = vector.extract_strided_slice %21 {offsets = [0, 0], sizes = [8, 8], strides = [1, 1]} : vector<16x16xf32> to vector<8x8xf32>
    %53 = vector.extract_strided_slice %21 {offsets = [0, 0], sizes = [8, 8], strides = [1, 1]} : vector<16x16xf32> to vector<8x8xf32>
    %54 = vector.extract_strided_slice %21 {offsets = [0, 8], sizes = [8, 8], strides = [1, 1]} : vector<16x16xf32> to vector<8x8xf32>
    %55 = vector.extract_strided_slice %21 {offsets = [0, 8], sizes = [8, 8], strides = [1, 1]} : vector<16x16xf32> to vector<8x8xf32>
    %56 = vector.shape_cast %52 : vector<8x8xf32> to vector<1x8x8xf32>
    %57 = vector.shape_cast %53 : vector<8x8xf32> to vector<1x8x8xf32>
    %58 = vector.shape_cast %54 : vector<8x8xf32> to vector<1x8x8xf32>
    %59 = vector.shape_cast %55 : vector<8x8xf32> to vector<1x8x8xf32>
    %60 = tpu.concatenate %56, %57, %58, %59 in 0 : vector<1x8x8xf32>, vector<1x8x8xf32>, vector<1x8x8xf32>, vector<1x8x8xf32> -> vector<4x8x8xf32>
    %61 = arith.truncf %42 : vector<4x8x8xf32> to vector<4x8x8xbf16>
    %62 = arith.truncf %51 : vector<4x8x8xf32> to vector<4x8x8xbf16>
    "tpu.trace_start"() <{level = 10 : i32, message = "hqd,hkd->hqk"}> : () -> ()
    %cst_12 = arith.constant dense<0.000000e+00> : vector<4x8x8xf32>
    %63 = tpu.matmul %61, %62, %cst_12 {dimension_numbers = #tpu.dot_dimension_numbers<[2], [2], [1], [1], [0, 0, 0, 1, 1, 1], [0], [0]>} : vector<4x8x8xbf16>, vector<4x8x8xbf16>, vector<4x8x8xf32> -> vector<4x8x8xf32>
    "tpu.trace_stop"() : () -> ()
    %cst_13 = arith.constant 8.000000e-02 : f32
    %64 = vector.broadcast %cst_13 : f32 to vector<4x8x8xf32>
    %65 = arith.mulf %63, %64 : vector<4x8x8xf32>
    %cst_14 = arith.constant 0.0333333351 : f32
    %66 = vector.broadcast %cst_14 : f32 to vector<4x8x8xf32>
    %67 = arith.mulf %65, %66 : vector<4x8x8xf32>
    %68 = math.tanh %67 : vector<4x8x8xf32>
    %cst_15 = arith.constant 3.000000e+01 : f32
    %69 = vector.broadcast %cst_15 : f32 to vector<4x8x8xf32>
    %70 = arith.mulf %69, %68 : vector<4x8x8xf32>
    %c0_16 = arith.constant 0 : index
    %c0_17 = arith.constant 0 : index
    %c0_18 = arith.constant 0 : index
    %71 = vector.load %arg3[%c0_16, %c0_17, %c0_18] : memref<2x8x8xf32, #tpu.memory_space<vmem>>, vector<1x8x8xf32>
    %72 = vector.shape_cast %71 : vector<1x8x8xf32> to vector<8x8xf32>
    %73 = vector.shape_cast %72 : vector<8x8xf32> to vector<1x8x8xf32>
    %74 = vector.broadcast %73 : vector<1x8x8xf32> to vector<4x8x8xf32>
    %75 = arith.addf %70, %74 : vector<4x8x8xf32>
    %cst_19 = arith.constant 3.000000e+01 : f32
    %76 = vector.broadcast %cst_19 : f32 to vector<4x8x8xf32>
    %77 = arith.subf %75, %76 : vector<4x8x8xf32>
    %78 = math.exp %77 : vector<4x8x8xf32>
    %cst_20 = arith.constant dense<0.000000e+00> : vector<4x8xf32>
    %79 = vector.multi_reduction <add>, %78, %cst_20 [2] : vector<4x8x8xf32> to vector<4x8xf32>
    %80 = vector.shape_cast %79 : vector<4x8xf32> to vector<4x8x1xf32>
    %81 = vector.broadcast %80 : vector<4x8x1xf32> to vector<4x8x8xf32>
    %82 = arith.divf %78, %81 : vector<4x8x8xf32>
    %83 = arith.truncf %82 : vector<4x8x8xf32> to vector<4x8x8xbf16>
    %84 = arith.truncf %60 : vector<4x8x8xf32> to vector<4x8x8xbf16>
    "tpu.trace_start"() <{level = 10 : i32, message = "hqk,hkd->hqd"}> : () -> ()
    %cst_21 = arith.constant dense<0.000000e+00> : vector<4x8x8xf32>
    %85 = tpu.matmul %83, %84, %cst_21 {dimension_numbers = #tpu.dot_dimension_numbers<[2], [1], [1], [2], [0, 0, 0, 1, 1, 2], [0], [0]>} : vector<4x8x8xbf16>, vector<4x8x8xbf16>, vector<4x8x8xf32> -> vector<4x8x8xf32>
    "tpu.trace_stop"() : () -> ()
    %86 = vector.extract_strided_slice %85 {offsets = [0, 0, 0], sizes = [1, 8, 8], strides = [1, 1, 1]} : vector<4x8x8xf32> to vector<1x8x8xf32>
    %87 = vector.shape_cast %86 : vector<1x8x8xf32> to vector<8x8xf32>
    %88 = vector.extract_strided_slice %85 {offsets = [1, 0, 0], sizes = [1, 8, 8], strides = [1, 1, 1]} : vector<4x8x8xf32> to vector<1x8x8xf32>
    %89 = vector.shape_cast %88 : vector<1x8x8xf32> to vector<8x8xf32>
    %90 = vector.extract_strided_slice %85 {offsets = [2, 0, 0], sizes = [1, 8, 8], strides = [1, 1, 1]} : vector<4x8x8xf32> to vector<1x8x8xf32>
    %91 = vector.shape_cast %90 : vector<1x8x8xf32> to vector<8x8xf32>
    %92 = vector.extract_strided_slice %85 {offsets = [3, 0, 0], sizes = [1, 8, 8], strides = [1, 1, 1]} : vector<4x8x8xf32> to vector<1x8x8xf32>
    %93 = vector.shape_cast %92 : vector<1x8x8xf32> to vector<8x8xf32>
    %94 = tpu.concatenate %87, %89, %91, %93 in 1 : vector<8x8xf32>, vector<8x8xf32>, vector<8x8xf32>, vector<8x8xf32> -> vector<8x32xf32>
    %95 = vector.extract_strided_slice %30 {offsets = [8, 0], sizes = [8, 8], strides = [1, 1]} : vector<16x32xf32> to vector<8x8xf32>
    %96 = vector.extract_strided_slice %30 {offsets = [8, 8], sizes = [8, 8], strides = [1, 1]} : vector<16x32xf32> to vector<8x8xf32>
    %97 = vector.extract_strided_slice %30 {offsets = [8, 16], sizes = [8, 8], strides = [1, 1]} : vector<16x32xf32> to vector<8x8xf32>
    %98 = vector.extract_strided_slice %30 {offsets = [8, 24], sizes = [8, 8], strides = [1, 1]} : vector<16x32xf32> to vector<8x8xf32>
    %99 = vector.shape_cast %95 : vector<8x8xf32> to vector<1x8x8xf32>
    %100 = vector.shape_cast %96 : vector<8x8xf32> to vector<1x8x8xf32>
    %101 = vector.shape_cast %97 : vector<8x8xf32> to vector<1x8x8xf32>
    %102 = vector.shape_cast %98 : vector<8x8xf32> to vector<1x8x8xf32>
    %103 = tpu.concatenate %99, %100, %101, %102 in 0 : vector<1x8x8xf32>, vector<1x8x8xf32>, vector<1x8x8xf32>, vector<1x8x8xf32> -> vector<4x8x8xf32>
    %104 = vector.extract_strided_slice %33 {offsets = [8, 0], sizes = [8, 8], strides = [1, 1]} : vector<16x16xf32> to vector<8x8xf32>
    %105 = vector.extract_strided_slice %33 {offsets = [8, 0], sizes = [8, 8], strides = [1, 1]} : vector<16x16xf32> to vector<8x8xf32>
    %106 = vector.extract_strided_slice %33 {offsets = [8, 8], sizes = [8, 8], strides = [1, 1]} : vector<16x16xf32> to vector<8x8xf32>
    %107 = vector.extract_strided_slice %33 {offsets = [8, 8], sizes = [8, 8], strides = [1, 1]} : vector<16x16xf32> to vector<8x8xf32>
    %108 = vector.shape_cast %104 : vector<8x8xf32> to vector<1x8x8xf32>
    %109 = vector.shape_cast %105 : vector<8x8xf32> to vector<1x8x8xf32>
    %110 = vector.shape_cast %106 : vector<8x8xf32> to vector<1x8x8xf32>
    %111 = vector.shape_cast %107 : vector<8x8xf32> to vector<1x8x8xf32>
    %112 = tpu.concatenate %108, %109, %110, %111 in 0 : vector<1x8x8xf32>, vector<1x8x8xf32>, vector<1x8x8xf32>, vector<1x8x8xf32> -> vector<4x8x8xf32>
    %113 = vector.extract_strided_slice %21 {offsets = [8, 0], sizes = [8, 8], strides = [1, 1]} : vector<16x16xf32> to vector<8x8xf32>
    %114 = vector.extract_strided_slice %21 {offsets = [8, 0], sizes = [8, 8], strides = [1, 1]} : vector<16x16xf32> to vector<8x8xf32>
    %115 = vector.extract_strided_slice %21 {offsets = [8, 8], sizes = [8, 8], strides = [1, 1]} : vector<16x16xf32> to vector<8x8xf32>
    %116 = vector.extract_strided_slice %21 {offsets = [8, 8], sizes = [8, 8], strides = [1, 1]} : vector<16x16xf32> to vector<8x8xf32>
    %117 = vector.shape_cast %113 : vector<8x8xf32> to vector<1x8x8xf32>
    %118 = vector.shape_cast %114 : vector<8x8xf32> to vector<1x8x8xf32>
    %119 = vector.shape_cast %115 : vector<8x8xf32> to vector<1x8x8xf32>
    %120 = vector.shape_cast %116 : vector<8x8xf32> to vector<1x8x8xf32>
    %121 = tpu.concatenate %117, %118, %119, %120 in 0 : vector<1x8x8xf32>, vector<1x8x8xf32>, vector<1x8x8xf32>, vector<1x8x8xf32> -> vector<4x8x8xf32>
    %122 = arith.truncf %103 : vector<4x8x8xf32> to vector<4x8x8xbf16>
    %123 = arith.truncf %112 : vector<4x8x8xf32> to vector<4x8x8xbf16>
    "tpu.trace_start"() <{level = 10 : i32, message = "hqd,hkd->hqk"}> : () -> ()
    %cst_22 = arith.constant dense<0.000000e+00> : vector<4x8x8xf32>
    %124 = tpu.matmul %122, %123, %cst_22 {dimension_numbers = #tpu.dot_dimension_numbers<[2], [2], [1], [1], [0, 0, 0, 1, 1, 1], [0], [0]>} : vector<4x8x8xbf16>, vector<4x8x8xbf16>, vector<4x8x8xf32> -> vector<4x8x8xf32>
    "tpu.trace_stop"() : () -> ()
    %cst_23 = arith.constant 8.000000e-02 : f32
    %125 = vector.broadcast %cst_23 : f32 to vector<4x8x8xf32>
    %126 = arith.mulf %124, %125 : vector<4x8x8xf32>
    %cst_24 = arith.constant 0.0333333351 : f32
    %127 = vector.broadcast %cst_24 : f32 to vector<4x8x8xf32>
    %128 = arith.mulf %126, %127 : vector<4x8x8xf32>
    %129 = math.tanh %128 : vector<4x8x8xf32>
    %cst_25 = arith.constant 3.000000e+01 : f32
    %130 = vector.broadcast %cst_25 : f32 to vector<4x8x8xf32>
    %131 = arith.mulf %130, %129 : vector<4x8x8xf32>
    %c1 = arith.constant 1 : index
    %c0_26 = arith.constant 0 : index
    %c0_27 = arith.constant 0 : index
    %132 = vector.load %arg3[%c1, %c0_26, %c0_27] : memref<2x8x8xf32, #tpu.memory_space<vmem>>, vector<1x8x8xf32>
    %133 = vector.shape_cast %132 : vector<1x8x8xf32> to vector<8x8xf32>
    %134 = vector.shape_cast %133 : vector<8x8xf32> to vector<1x8x8xf32>
    %135 = vector.broadcast %134 : vector<1x8x8xf32> to vector<4x8x8xf32>
    %136 = arith.addf %131, %135 : vector<4x8x8xf32>
    %cst_28 = arith.constant 3.000000e+01 : f32
    %137 = vector.broadcast %cst_28 : f32 to vector<4x8x8xf32>
    %138 = arith.subf %136, %137 : vector<4x8x8xf32>
    %139 = math.exp %138 : vector<4x8x8xf32>
    %cst_29 = arith.constant dense<0.000000e+00> : vector<4x8xf32>
    %140 = vector.multi_reduction <add>, %139, %cst_29 [2] : vector<4x8x8xf32> to vector<4x8xf32>
    %141 = vector.shape_cast %140 : vector<4x8xf32> to vector<4x8x1xf32>
    %142 = vector.broadcast %141 : vector<4x8x1xf32> to vector<4x8x8xf32>
    %143 = arith.divf %139, %142 : vector<4x8x8xf32>
    %144 = arith.truncf %143 : vector<4x8x8xf32> to vector<4x8x8xbf16>
    %145 = arith.truncf %121 : vector<4x8x8xf32> to vector<4x8x8xbf16>
    "tpu.trace_start"() <{level = 10 : i32, message = "hqk,hkd->hqd"}> : () -> ()
    %cst_30 = arith.constant dense<0.000000e+00> : vector<4x8x8xf32>
    %146 = tpu.matmul %144, %145, %cst_30 {dimension_numbers = #tpu.dot_dimension_numbers<[2], [1], [1], [2], [0, 0, 0, 1, 1, 2], [0], [0]>} : vector<4x8x8xbf16>, vector<4x8x8xbf16>, vector<4x8x8xf32> -> vector<4x8x8xf32>
    "tpu.trace_stop"() : () -> ()
    %147 = vector.extract_strided_slice %146 {offsets = [0, 0, 0], sizes = [1, 8, 8], strides = [1, 1, 1]} : vector<4x8x8xf32> to vector<1x8x8xf32>
    %148 = vector.shape_cast %147 : vector<1x8x8xf32> to vector<8x8xf32>
    %149 = vector.extract_strided_slice %146 {offsets = [1, 0, 0], sizes = [1, 8, 8], strides = [1, 1, 1]} : vector<4x8x8xf32> to vector<1x8x8xf32>
    %150 = vector.shape_cast %149 : vector<1x8x8xf32> to vector<8x8xf32>
    %151 = vector.extract_strided_slice %146 {offsets = [2, 0, 0], sizes = [1, 8, 8], strides = [1, 1, 1]} : vector<4x8x8xf32> to vector<1x8x8xf32>
    %152 = vector.shape_cast %151 : vector<1x8x8xf32> to vector<8x8xf32>
    %153 = vector.extract_strided_slice %146 {offsets = [3, 0, 0], sizes = [1, 8, 8], strides = [1, 1, 1]} : vector<4x8x8xf32> to vector<1x8x8xf32>
    %154 = vector.shape_cast %153 : vector<1x8x8xf32> to vector<8x8xf32>
    %155 = tpu.concatenate %148, %150, %152, %154 in 1 : vector<8x8xf32>, vector<8x8xf32>, vector<8x8xf32>, vector<8x8xf32> -> vector<8x32xf32>
    %156 = tpu.concatenate %94, %155 in 0 : vector<8x32xf32>, vector<8x32xf32> -> vector<16x32xf32>
    %157 = arith.truncf %156 : vector<16x32xf32> to vector<16x32xbf16>
    %c0_31 = arith.constant 0 : index
    %c0_32 = arith.constant 0 : index
    %158 = vector.load %arg5[%c0_31, %c0_32] : memref<32x32xbf16, #tpu.memory_space<vmem>>, vector<32x32xbf16>
    %cst_33 = arith.constant dense<0.000000e+00> : vector<16x32xf32>
    %159 = tpu.matmul %157, %158, %cst_33 {dimension_numbers = #tpu.dot_dimension_numbers<[1], [0], [0], [1], [0, 0, 1, 1], [], []>} : vector<16x32xbf16>, vector<32x32xbf16>, vector<16x32xf32> -> vector<16x32xf32>
    %c0_34 = arith.constant 0 : index
    %c0_35 = arith.constant 0 : index
    %160 = vector.load %arg11[%c0_34, %c0_35] : memref<1x32xf32, #tpu.memory_space<vmem>>, vector<1x32xf32>
    %161 = arith.mulf %159, %159 : vector<16x32xf32>
    %cst_36 = arith.constant dense<0.000000e+00> : vector<16xf32>
    %162 = vector.multi_reduction <add>, %161, %cst_36 [1] : vector<16x32xf32> to vector<16xf32>
    %163 = vector.shape_cast %162 : vector<16xf32> to vector<16x1xf32>
    %cst_37 = arith.constant 3.200000e+01 : f32
    %164 = vector.broadcast %cst_37 : f32 to vector<16x1xf32>
    %165 = arith.divf %163, %164 : vector<16x1xf32>
    %cst_38 = arith.constant 9.99999974E-6 : f32
    %166 = vector.broadcast %cst_38 : f32 to vector<16x1xf32>
    %167 = arith.addf %165, %166 : vector<16x1xf32>
    %168 = math.rsqrt %167 : vector<16x1xf32>
    %169 = vector.broadcast %168 : vector<16x1xf32> to vector<16x32xf32>
    %170 = arith.mulf %159, %169 : vector<16x32xf32>
    %171 = vector.broadcast %160 : vector<1x32xf32> to vector<16x32xf32>
    %172 = arith.mulf %171, %170 : vector<16x32xf32>
    %173 = arith.addf %0, %172 : vector<16x32xf32>
    %c0_39 = arith.constant 0 : index
    %c0_40 = arith.constant 0 : index
    %174 = vector.load %arg12[%c0_39, %c0_40] : memref<1x32xf32, #tpu.memory_space<vmem>>, vector<1x32xf32>
    %175 = arith.mulf %173, %173 : vector<16x32xf32>
    %cst_41 = arith.constant dense<0.000000e+00> : vector<16xf32>
    %176 = vector.multi_reduction <add>, %175, %cst_41 [1] : vector<16x32xf32> to vector<16xf32>
    %177 = vector.shape_cast %176 : vector<16xf32> to vector<16x1xf32>
    %cst_42 = arith.constant 3.200000e+01 : f32
    %178 = vector.broadcast %cst_42 : f32 to vector<16x1xf32>
    %179 = arith.divf %177, %178 : vector<16x1xf32>
    %cst_43 = arith.constant 9.99999974E-6 : f32
    %180 = vector.broadcast %cst_43 : f32 to vector<16x1xf32>
    %181 = arith.addf %179, %180 : vector<16x1xf32>
    %182 = math.rsqrt %181 : vector<16x1xf32>
    %183 = vector.broadcast %182 : vector<16x1xf32> to vector<16x32xf32>
    %184 = arith.mulf %173, %183 : vector<16x32xf32>
    %185 = vector.broadcast %174 : vector<1x32xf32> to vector<16x32xf32>
    %186 = arith.mulf %185, %184 : vector<16x32xf32>
    %187 = arith.truncf %186 : vector<16x32xf32> to vector<16x32xbf16>
    %c0_44 = arith.constant 0 : index
    %c0_45 = arith.constant 0 : index
    %188 = vector.load %arg6[%c0_44, %c0_45] : memref<32x4xbf16, #tpu.memory_space<vmem>>, vector<32x4xbf16>
    %cst_46 = arith.constant dense<0.000000e+00> : vector<16x4xf32>
    %189 = tpu.matmul %187, %188, %cst_46 {dimension_numbers = #tpu.dot_dimension_numbers<[1], [0], [0], [1], [0, 0, 1, 1], [], []>} : vector<16x32xbf16>, vector<32x4xbf16>, vector<16x4xf32> -> vector<16x4xf32>
    %cst_47 = arith.constant dense<0xFF800000> : vector<16xf32>
    %190 = vector.multi_reduction <maximumf>, %189, %cst_47 [1] : vector<16x4xf32> to vector<16xf32>
    %191 = vector.shape_cast %190 : vector<16xf32> to vector<16x1xf32>
    %192 = vector.broadcast %191 : vector<16x1xf32> to vector<16x4xf32>
    %193 = arith.subf %189, %192 : vector<16x4xf32>
    %194 = math.exp %193 : vector<16x4xf32>
    %cst_48 = arith.constant dense<0.000000e+00> : vector<16xf32>
    %195 = vector.multi_reduction <add>, %194, %cst_48 [1] : vector<16x4xf32> to vector<16xf32>
    %196 = vector.shape_cast %195 : vector<16xf32> to vector<16x1xf32>
    %197 = vector.broadcast %196 : vector<16x1xf32> to vector<16x4xf32>
    %198 = arith.divf %194, %197 : vector<16x4xf32>
    %199 = tpu.iota {dimensions = array<i32: 1>} : vector<16x4xi32>
    %200 = arith.sitofp %199 : vector<16x4xi32> to vector<16x4xf32>
    %cst_49 = arith.constant 0.000000e+00 : f32
    %201 = vector.broadcast %cst_49 : f32 to vector<16x4xf32>
    %cst_50 = arith.constant dense<0xFF800000> : vector<16xf32>
    %202 = vector.multi_reduction <maximumf>, %198, %cst_50 [1] : vector<16x4xf32> to vector<16xf32>
    %203 = vector.shape_cast %202 : vector<16xf32> to vector<16x1xf32>
    %204 = vector.broadcast %203 : vector<16x1xf32> to vector<16x4xf32>
    %205 = arith.cmpf oge, %198, %204 : vector<16x4xf32>
    %cst_51 = arith.constant 4.000000e+00 : f32
    %206 = vector.broadcast %cst_51 : f32 to vector<16x4xf32>
    %207 = arith.select %205, %200, %206 : vector<16x4xi1>, vector<16x4xf32>
    %cst_52 = arith.constant dense<0x7F800000> : vector<16xf32>
    %208 = vector.multi_reduction <minimumf>, %207, %cst_52 [1] : vector<16x4xf32> to vector<16xf32>
    %209 = vector.shape_cast %208 : vector<16xf32> to vector<16x1xf32>
    %210 = vector.broadcast %209 : vector<16x1xf32> to vector<16x4xf32>
    %211 = arith.cmpf oeq, %200, %210 : vector<16x4xf32>
    %cst_53 = arith.constant 0.000000e+00 : f32
    %212 = vector.shape_cast %203 : vector<16x1xf32> to vector<16x1xf32>
    %213 = vector.broadcast %212 : vector<16x1xf32> to vector<16x4xf32>
    %214 = vector.broadcast %cst_53 : f32 to vector<16x4xf32>
    %215 = arith.select %211, %213, %214 : vector<16x4xi1>, vector<16x4xf32>
    %216 = arith.addf %201, %215 : vector<16x4xf32>
    %cst_54 = arith.constant -1.000000e+00 : f32
    %217 = vector.broadcast %cst_54 : f32 to vector<16x4xf32>
    %218 = arith.select %211, %217, %198 : vector<16x4xi1>, vector<16x4xf32>
    %cst_55 = arith.constant dense<0xFF800000> : vector<16xf32>
    %219 = vector.multi_reduction <maximumf>, %218, %cst_55 [1] : vector<16x4xf32> to vector<16xf32>
    %220 = vector.shape_cast %219 : vector<16xf32> to vector<16x1xf32>
    %221 = vector.broadcast %220 : vector<16x1xf32> to vector<16x4xf32>
    %222 = arith.cmpf oge, %218, %221 : vector<16x4xf32>
    %cst_56 = arith.constant 4.000000e+00 : f32
    %223 = vector.broadcast %cst_56 : f32 to vector<16x4xf32>
    %224 = arith.select %222, %200, %223 : vector<16x4xi1>, vector<16x4xf32>
    %cst_57 = arith.constant dense<0x7F800000> : vector<16xf32>
    %225 = vector.multi_reduction <minimumf>, %224, %cst_57 [1] : vector<16x4xf32> to vector<16xf32>
    %226 = vector.shape_cast %225 : vector<16xf32> to vector<16x1xf32>
    %227 = vector.broadcast %226 : vector<16x1xf32> to vector<16x4xf32>
    %228 = arith.cmpf oeq, %200, %227 : vector<16x4xf32>
    %cst_58 = arith.constant 0.000000e+00 : f32
    %229 = vector.shape_cast %220 : vector<16x1xf32> to vector<16x1xf32>
    %230 = vector.broadcast %229 : vector<16x1xf32> to vector<16x4xf32>
    %231 = vector.broadcast %cst_58 : f32 to vector<16x4xf32>
    %232 = arith.select %228, %230, %231 : vector<16x4xi1>, vector<16x4xf32>
    %233 = arith.addf %216, %232 : vector<16x4xf32>
    %cst_59 = arith.constant 0.000000e+00 : f32
    %234 = vector.broadcast %cst_59 : f32 to vector<16x32xf32>
    %c0_60 = arith.constant 0 : index
    %c0_61 = arith.constant 0 : index
    %c0_62 = arith.constant 0 : index
    %235 = vector.load %arg7[%c0_60, %c0_61, %c0_62] : memref<4x32x64xbf16, #tpu.memory_space<vmem>>, vector<1x32x64xbf16>
    %236 = vector.shape_cast %235 : vector<1x32x64xbf16> to vector<32x64xbf16>
    %cst_63 = arith.constant dense<0.000000e+00> : vector<16x64xf32>
    %237 = tpu.matmul %187, %236, %cst_63 {dimension_numbers = #tpu.dot_dimension_numbers<[1], [0], [0], [1], [0, 0, 1, 1], [], []>} : vector<16x32xbf16>, vector<32x64xbf16>, vector<16x64xf32> -> vector<16x64xf32>
    %c0_64 = arith.constant 0 : index
    %c0_65 = arith.constant 0 : index
    %c0_66 = arith.constant 0 : index
    %238 = vector.load %arg8[%c0_64, %c0_65, %c0_66] : memref<4x32x64xbf16, #tpu.memory_space<vmem>>, vector<1x32x64xbf16>
    %239 = vector.shape_cast %238 : vector<1x32x64xbf16> to vector<32x64xbf16>
    %cst_67 = arith.constant dense<0.000000e+00> : vector<16x64xf32>
    %240 = tpu.matmul %187, %239, %cst_67 {dimension_numbers = #tpu.dot_dimension_numbers<[1], [0], [0], [1], [0, 0, 1, 1], [], []>} : vector<16x32xbf16>, vector<32x64xbf16>, vector<16x64xf32> -> vector<16x64xf32>
    %cst_68 = arith.constant 5.000000e-01 : f32
    %241 = vector.broadcast %cst_68 : f32 to vector<16x64xf32>
    %242 = arith.mulf %241, %237 : vector<16x64xf32>
    %cst_69 = arith.constant 0.707106769 : f32
    %243 = vector.broadcast %cst_69 : f32 to vector<16x64xf32>
    %244 = arith.mulf %237, %243 : vector<16x64xf32>
    %245 = math.erf %244 : vector<16x64xf32>
    %cst_70 = arith.constant 1.000000e+00 : f32
    %246 = vector.broadcast %cst_70 : f32 to vector<16x64xf32>
    %247 = arith.addf %246, %245 : vector<16x64xf32>
    %248 = arith.mulf %242, %247 : vector<16x64xf32>
    %249 = arith.mulf %248, %240 : vector<16x64xf32>
    %250 = arith.truncf %249 : vector<16x64xf32> to vector<16x64xbf16>
    %c0_71 = arith.constant 0 : index
    %c0_72 = arith.constant 0 : index
    %c0_73 = arith.constant 0 : index
    %251 = vector.load %arg9[%c0_71, %c0_72, %c0_73] : memref<4x64x32xbf16, #tpu.memory_space<vmem>>, vector<1x64x32xbf16>
    %252 = vector.shape_cast %251 : vector<1x64x32xbf16> to vector<64x32xbf16>
    %cst_74 = arith.constant dense<0.000000e+00> : vector<16x32xf32>
    %253 = tpu.matmul %250, %252, %cst_74 {dimension_numbers = #tpu.dot_dimension_numbers<[1], [0], [0], [1], [0, 0, 1, 1], [], []>} : vector<16x64xbf16>, vector<64x32xbf16>, vector<16x32xf32> -> vector<16x32xf32>
    %254 = vector.extract_strided_slice %233 {offsets = [0, 0], sizes = [16, 1], strides = [1, 1]} : vector<16x4xf32> to vector<16x1xf32>
    %255 = vector.broadcast %254 : vector<16x1xf32> to vector<16x32xf32>
    %256 = arith.mulf %255, %253 : vector<16x32xf32>
    %257 = arith.addf %234, %256 : vector<16x32xf32>
    %c1_75 = arith.constant 1 : index
    %c0_76 = arith.constant 0 : index
    %c0_77 = arith.constant 0 : index
    %258 = vector.load %arg7[%c1_75, %c0_76, %c0_77] : memref<4x32x64xbf16, #tpu.memory_space<vmem>>, vector<1x32x64xbf16>
    %259 = vector.shape_cast %258 : vector<1x32x64xbf16> to vector<32x64xbf16>
    %cst_78 = arith.constant dense<0.000000e+00> : vector<16x64xf32>
    %260 = tpu.matmul %187, %259, %cst_78 {dimension_numbers = #tpu.dot_dimension_numbers<[1], [0], [0], [1], [0, 0, 1, 1], [], []>} : vector<16x32xbf16>, vector<32x64xbf16>, vector<16x64xf32> -> vector<16x64xf32>
    %c1_79 = arith.constant 1 : index
    %c0_80 = arith.constant 0 : index
    %c0_81 = arith.constant 0 : index
    %261 = vector.load %arg8[%c1_79, %c0_80, %c0_81] : memref<4x32x64xbf16, #tpu.memory_space<vmem>>, vector<1x32x64xbf16>
    %262 = vector.shape_cast %261 : vector<1x32x64xbf16> to vector<32x64xbf16>
    %cst_82 = arith.constant dense<0.000000e+00> : vector<16x64xf32>
    %263 = tpu.matmul %187, %262, %cst_82 {dimension_numbers = #tpu.dot_dimension_numbers<[1], [0], [0], [1], [0, 0, 1, 1], [], []>} : vector<16x32xbf16>, vector<32x64xbf16>, vector<16x64xf32> -> vector<16x64xf32>
    %cst_83 = arith.constant 5.000000e-01 : f32
    %264 = vector.broadcast %cst_83 : f32 to vector<16x64xf32>
    %265 = arith.mulf %264, %260 : vector<16x64xf32>
    %cst_84 = arith.constant 0.707106769 : f32
    %266 = vector.broadcast %cst_84 : f32 to vector<16x64xf32>
    %267 = arith.mulf %260, %266 : vector<16x64xf32>
    %268 = math.erf %267 : vector<16x64xf32>
    %cst_85 = arith.constant 1.000000e+00 : f32
    %269 = vector.broadcast %cst_85 : f32 to vector<16x64xf32>
    %270 = arith.addf %269, %268 : vector<16x64xf32>
    %271 = arith.mulf %265, %270 : vector<16x64xf32>
    %272 = arith.mulf %271, %263 : vector<16x64xf32>
    %273 = arith.truncf %272 : vector<16x64xf32> to vector<16x64xbf16>
    %c1_86 = arith.constant 1 : index
    %c0_87 = arith.constant 0 : index
    %c0_88 = arith.constant 0 : index
    %274 = vector.load %arg9[%c1_86, %c0_87, %c0_88] : memref<4x64x32xbf16, #tpu.memory_space<vmem>>, vector<1x64x32xbf16>
    %275 = vector.shape_cast %274 : vector<1x64x32xbf16> to vector<64x32xbf16>
    %cst_89 = arith.constant dense<0.000000e+00> : vector<16x32xf32>
    %276 = tpu.matmul %273, %275, %cst_89 {dimension_numbers = #tpu.dot_dimension_numbers<[1], [0], [0], [1], [0, 0, 1, 1], [], []>} : vector<16x64xbf16>, vector<64x32xbf16>, vector<16x32xf32> -> vector<16x32xf32>
    %277 = vector.extract_strided_slice %233 {offsets = [0, 1], sizes = [16, 1], strides = [1, 1]} : vector<16x4xf32> to vector<16x1xf32>
    %278 = vector.broadcast %277 : vector<16x1xf32> to vector<16x32xf32>
    %279 = arith.mulf %278, %276 : vector<16x32xf32>
    %280 = arith.addf %257, %279 : vector<16x32xf32>
    %c2 = arith.constant 2 : index
    %c0_90 = arith.constant 0 : index
    %c0_91 = arith.constant 0 : index
    %281 = vector.load %arg7[%c2, %c0_90, %c0_91] : memref<4x32x64xbf16, #tpu.memory_space<vmem>>, vector<1x32x64xbf16>
    %282 = vector.shape_cast %281 : vector<1x32x64xbf16> to vector<32x64xbf16>
    %cst_92 = arith.constant dense<0.000000e+00> : vector<16x64xf32>
    %283 = tpu.matmul %187, %282, %cst_92 {dimension_numbers = #tpu.dot_dimension_numbers<[1], [0], [0], [1], [0, 0, 1, 1], [], []>} : vector<16x32xbf16>, vector<32x64xbf16>, vector<16x64xf32> -> vector<16x64xf32>
    %c2_93 = arith.constant 2 : index
    %c0_94 = arith.constant 0 : index
    %c0_95 = arith.constant 0 : index
    %284 = vector.load %arg8[%c2_93, %c0_94, %c0_95] : memref<4x32x64xbf16, #tpu.memory_space<vmem>>, vector<1x32x64xbf16>
    %285 = vector.shape_cast %284 : vector<1x32x64xbf16> to vector<32x64xbf16>
    %cst_96 = arith.constant dense<0.000000e+00> : vector<16x64xf32>
    %286 = tpu.matmul %187, %285, %cst_96 {dimension_numbers = #tpu.dot_dimension_numbers<[1], [0], [0], [1], [0, 0, 1, 1], [], []>} : vector<16x32xbf16>, vector<32x64xbf16>, vector<16x64xf32> -> vector<16x64xf32>
    %cst_97 = arith.constant 5.000000e-01 : f32
    %287 = vector.broadcast %cst_97 : f32 to vector<16x64xf32>
    %288 = arith.mulf %287, %283 : vector<16x64xf32>
    %cst_98 = arith.constant 0.707106769 : f32
    %289 = vector.broadcast %cst_98 : f32 to vector<16x64xf32>
    %290 = arith.mulf %283, %289 : vector<16x64xf32>
    %291 = math.erf %290 : vector<16x64xf32>
    %cst_99 = arith.constant 1.000000e+00 : f32
    %292 = vector.broadcast %cst_99 : f32 to vector<16x64xf32>
    %293 = arith.addf %292, %291 : vector<16x64xf32>
    %294 = arith.mulf %288, %293 : vector<16x64xf32>
    %295 = arith.mulf %294, %286 : vector<16x64xf32>
    %296 = arith.truncf %295 : vector<16x64xf32> to vector<16x64xbf16>
    %c2_100 = arith.constant 2 : index
    %c0_101 = arith.constant 0 : index
    %c0_102 = arith.constant 0 : index
    %297 = vector.load %arg9[%c2_100, %c0_101, %c0_102] : memref<4x64x32xbf16, #tpu.memory_space<vmem>>, vector<1x64x32xbf16>
    %298 = vector.shape_cast %297 : vector<1x64x32xbf16> to vector<64x32xbf16>
    %cst_103 = arith.constant dense<0.000000e+00> : vector<16x32xf32>
    %299 = tpu.matmul %296, %298, %cst_103 {dimension_numbers = #tpu.dot_dimension_numbers<[1], [0], [0], [1], [0, 0, 1, 1], [], []>} : vector<16x64xbf16>, vector<64x32xbf16>, vector<16x32xf32> -> vector<16x32xf32>
    %300 = vector.extract_strided_slice %233 {offsets = [0, 2], sizes = [16, 1], strides = [1, 1]} : vector<16x4xf32> to vector<16x1xf32>
    %301 = vector.broadcast %300 : vector<16x1xf32> to vector<16x32xf32>
    %302 = arith.mulf %301, %299 : vector<16x32xf32>
    %303 = arith.addf %280, %302 : vector<16x32xf32>
    %c3 = arith.constant 3 : index
    %c0_104 = arith.constant 0 : index
    %c0_105 = arith.constant 0 : index
    %304 = vector.load %arg7[%c3, %c0_104, %c0_105] : memref<4x32x64xbf16, #tpu.memory_space<vmem>>, vector<1x32x64xbf16>
    %305 = vector.shape_cast %304 : vector<1x32x64xbf16> to vector<32x64xbf16>
    %cst_106 = arith.constant dense<0.000000e+00> : vector<16x64xf32>
    %306 = tpu.matmul %187, %305, %cst_106 {dimension_numbers = #tpu.dot_dimension_numbers<[1], [0], [0], [1], [0, 0, 1, 1], [], []>} : vector<16x32xbf16>, vector<32x64xbf16>, vector<16x64xf32> -> vector<16x64xf32>
    %c3_107 = arith.constant 3 : index
    %c0_108 = arith.constant 0 : index
    %c0_109 = arith.constant 0 : index
    %307 = vector.load %arg8[%c3_107, %c0_108, %c0_109] : memref<4x32x64xbf16, #tpu.memory_space<vmem>>, vector<1x32x64xbf16>
    %308 = vector.shape_cast %307 : vector<1x32x64xbf16> to vector<32x64xbf16>
    %cst_110 = arith.constant dense<0.000000e+00> : vector<16x64xf32>
    %309 = tpu.matmul %187, %308, %cst_110 {dimension_numbers = #tpu.dot_dimension_numbers<[1], [0], [0], [1], [0, 0, 1, 1], [], []>} : vector<16x32xbf16>, vector<32x64xbf16>, vector<16x64xf32> -> vector<16x64xf32>
    %cst_111 = arith.constant 5.000000e-01 : f32
    %310 = vector.broadcast %cst_111 : f32 to vector<16x64xf32>
    %311 = arith.mulf %310, %306 : vector<16x64xf32>
    %cst_112 = arith.constant 0.707106769 : f32
    %312 = vector.broadcast %cst_112 : f32 to vector<16x64xf32>
    %313 = arith.mulf %306, %312 : vector<16x64xf32>
    %314 = math.erf %313 : vector<16x64xf32>
    %cst_113 = arith.constant 1.000000e+00 : f32
    %315 = vector.broadcast %cst_113 : f32 to vector<16x64xf32>
    %316 = arith.addf %315, %314 : vector<16x64xf32>
    %317 = arith.mulf %311, %316 : vector<16x64xf32>
    %318 = arith.mulf %317, %309 : vector<16x64xf32>
    %319 = arith.truncf %318 : vector<16x64xf32> to vector<16x64xbf16>
    %c3_114 = arith.constant 3 : index
    %c0_115 = arith.constant 0 : index
    %c0_116 = arith.constant 0 : index
    %320 = vector.load %arg9[%c3_114, %c0_115, %c0_116] : memref<4x64x32xbf16, #tpu.memory_space<vmem>>, vector<1x64x32xbf16>
    %321 = vector.shape_cast %320 : vector<1x64x32xbf16> to vector<64x32xbf16>
    %cst_117 = arith.constant dense<0.000000e+00> : vector<16x32xf32>
    %322 = tpu.matmul %319, %321, %cst_117 {dimension_numbers = #tpu.dot_dimension_numbers<[1], [0], [0], [1], [0, 0, 1, 1], [], []>} : vector<16x64xbf16>, vector<64x32xbf16>, vector<16x32xf32> -> vector<16x32xf32>
    %323 = vector.extract_strided_slice %233 {offsets = [0, 3], sizes = [16, 1], strides = [1, 1]} : vector<16x4xf32> to vector<16x1xf32>
    %324 = vector.broadcast %323 : vector<16x1xf32> to vector<16x32xf32>
    %325 = arith.mulf %324, %322 : vector<16x32xf32>
    %326 = arith.addf %303, %325 : vector<16x32xf32>
    %c0_118 = arith.constant 0 : index
    %c0_119 = arith.constant 0 : index
    %327 = vector.load %arg13[%c0_118, %c0_119] : memref<1x32xf32, #tpu.memory_space<vmem>>, vector<1x32xf32>
    %328 = arith.mulf %326, %326 : vector<16x32xf32>
    %cst_120 = arith.constant dense<0.000000e+00> : vector<16xf32>
    %329 = vector.multi_reduction <add>, %328, %cst_120 [1] : vector<16x32xf32> to vector<16xf32>
    %330 = vector.shape_cast %329 : vector<16xf32> to vector<16x1xf32>
    %cst_121 = arith.constant 3.200000e+01 : f32
    %331 = vector.broadcast %cst_121 : f32 to vector<16x1xf32>
    %332 = arith.divf %330, %331 : vector<16x1xf32>
    %cst_122 = arith.constant 9.99999974E-6 : f32
    %333 = vector.broadcast %cst_122 : f32 to vector<16x1xf32>
    %334 = arith.addf %332, %333 : vector<16x1xf32>
    %335 = math.rsqrt %334 : vector<16x1xf32>
    %336 = vector.broadcast %335 : vector<16x1xf32> to vector<16x32xf32>
    %337 = arith.mulf %326, %336 : vector<16x32xf32>
    %338 = vector.broadcast %327 : vector<1x32xf32> to vector<16x32xf32>
    %339 = arith.mulf %338, %337 : vector<16x32xf32>
    %340 = arith.addf %173, %339 : vector<16x32xf32>
    %c0_123 = arith.constant 0 : index
    %c0_124 = arith.constant 0 : index
    %341 = vector.load %arg14[%c0_123, %c0_124] : memref<16x32xf32, #tpu.memory_space<vmem>>, vector<16x32xf32>
    tpu.vector_store %arg14[%c0_123, %c0_124], %340 {strides = array<i32>} : memref<16x32xf32, #tpu.memory_space<vmem>>, vector<16x32xf32>,
    return
  }
}

</mosaic_0001>

<bundles_post_ra>
// kernel: decoder_layer_forward.1
= control target key start
LH: loop header
LB: loop body
LE: loop exit
PB: predicated region body
PF: predicated region fallthrough
CT: control target
= control target key end

     0   :  { %vm54_vm0 = vcmask 261120   ;;  %s2489_s17 = smov 8   ;;  %s3232_s0 = inlined_call_operand.vmem [shape: f32[16,32], index: 0, kind: input, shape index: {}]   ;;  %s3233_s1 = inlined_call_operand.vmem [shape: f32[16,8], index: 1, kind: input, shape index: {}]   ;;  %s3234_s2 = inlined_call_operand.vmem [shape: f32[16,8], index: 2, kind: input, shape index: {}]   ;;  %s3235_s3 = inlined_call_operand.vmem [shape: f32[2,8,8], index: 3, kind: input, shape index: {}]   ;;  %s3236_s4 = inlined_call_operand.vmem [shape: bf16[32,112], index: 4, kind: input, shape index: {}]   ;;  %s3237_s5 = inlined_call_operand.vmem [shape: bf16[32,32], index: 5, kind: input, shape index: {}]   ;;  %s3238_s6 = inlined_call_operand.vmem [shape: bf16[32,4], index: 6, kind: input, shape index: {}]   ;;  %s3239_s7 = inlined_call_operand.vmem [shape: bf16[4,32,64], index: 7, kind: input, shape index: {}]   ;;  %s3240_s8 = inlined_call_operand.vmem [shape: bf16[4,32,64], index: 8, kind: input, shape index: {}]   ;;  %s3241_s9 = inlined_call_operand.vmem [shape: bf16[4,64,32], index: 9, kind: input, shape index: {}]   ;;  %s3242_s10 = inlined_call_operand.vmem [shape: f32[1,32], index: 10, kind: input, shape index: {}]   ;;  %s3243_s11 = inlined_call_operand.vmem [shape: f32[1,32], index: 11, kind: input, shape index: {}]   ;;  %s3244_s12 = inlined_call_operand.vmem [shape: f32[1,32], index: 12, kind: input, shape index: {}]   ;;  %s3245_s13 = inlined_call_operand.vmem [shape: f32[1,32], index: 13, kind: input, shape index: {}]   ;;  %s3246_s14 = inlined_call_operand.hbm [shape: f32[16,32], index: 14, kind: output, shape index: {}]  }
   0x1   :  { %v135_v0 = vld [vmem:[%s3234_s2] sm:$0xff]  ;;  %v2595_v3 = vld [vmem:[%s3232_s0 + $0x8] sm:$0xff] }
   0x2   :  { %v2587_v1 = vld [vmem:[%s3232_s0] sm:$0xff]  ;;  %168 = vrot.lane.b32.xlu1 %v135_v0, %s2489_s17 }
   0x3   :  { %v52_v2 = vmul.f32 %v2587_v1, %v2587_v1 }
   0x5   :  { %v55_v4 = vsel %vm54_vm0, %v52_v2, 0.0 }
   0x6   :  { %19 = vsyncpa [#allocation3], 0  ;;  %56 = vadd.xlane.f32.xlu0 %v55_v4  ;;  %v53_v5 = vmul.f32 %v2595_v3, %v2595_v3  ;;  %v2603_v6 = vld [vmem:[%s3233_s1] sm:$0xff]  ;;  %s2490_s22 = smov 24   ;;  %v2491_v8 = vmov 32.0   ;;  %vm157_vm1 = vcmask 64512  }
   0x7   :  { %2371 = vrcp.f32 %v2491_v8  ;;  %v2285_v15 = vld [vmem:[%s3236_s4 + $0x8] sm:$0xff]  ;;  %s2492_s25 = smov 80   ;;  %v2284_v18 = vld [vmem:[%s3236_s4] sm:$0xff]  ;;  %s2493_s28 = smov 16   ;;  %vm160_vm9 = vcmask 130048   ;;  %vm163_vm10 = vcmask 195584  }
   0x8   :  { %v58_v7 = vsel %vm54_vm0, %v53_v5, 0.0  ;;  %125 = vmatpush.bf16.msra.mxu0 %v2285_v15  ;;  %s2494_s29 = smov 64   ;;  %v2367_v41 = vld [vmem:[%s3242_s10] ss:$0 sm:$0xff]  ;;  %s2495_s15 = smov 32   ;;  %vm467_vm11 = vcmask 1043456  }
   0x9   :  { %s2496_s10 = smov 112   ;;  %s2497_s16 = smov 96  }
   0xa   :  { %139 = vrot.lane.b32.xlu1 %v2603_v6, %s2489_s17  ;;  %s2498_s18 = smov 120   ;;  %s2499_s19 = smov 104  }
   0xb   :  { %s2504_s30 = smov [#allocation2]  }
   0xc   :  { %126 = vmatpush.bf16.msra.mxu0 %v2284_v18 }
   0xd   :  { %v2372_v9 = vpop.eup %2371 }
   0xe   :  { %59 = vadd.xlane.f32.xlu0 %v58_v7  ;;  %v62_v10 = vmul.f32 32.0, %v2372_v9  ;;  %vm66_vm2 = vweird.f32 %v2372_v9 }
  0x10   :  { %v63_v11 = vsub.f32 1.0, %v62_v10 }
  0x12   :  { %v64_v12 = vmul.f32 %v2372_v9, %v63_v11  ;;  %v134_v11 = vld [vmem:[%s3233_s1 + $0x8] sm:$0xff] }
  0x14   :  { %v65_v13 = vadd.f32 %v2372_v9, %v64_v12 }
  0x16   :  { %v2614_v17 = vsel %vm66_vm2, %v2372_v9, %v65_v13 }
  0x22   :  { %180 = vrot.lane.b32.xlu0 %v135_v0, %s2490_s22 }
  0x74   :  { %v169_v14 = vpop.permute.xlu1 %168 }
  0x75   :  { %v186_v16 = vsel %vm157_vm1, %v135_v0, %v169_v14 }
  0x76   :  { %226 = vrot.lane.b32.xlu2 %v186_v16, %s2492_s25 }
  0x79   :  { %v57_v19 = vpop.xlane.xlu0 %56 }
  0x7a   :  { %v68_v20 = vmul.f32 %v2614_v17, %v57_v19 }
  0x7c   :  { %v70_v21 = vadd.f32 1e-05, %v68_v20  ;;  %v140_v22 = vpop.permute.xlu1 %139 }
  0x7d   :  { %v2623_v23 = vsel %vm157_vm1, %v2603_v6, %v140_v22 }
  0x7e   :  { %2373 = vrsqrt.f32 %v70_v21  ;;  %174 = vrot.lane.b32.xlu2 %v135_v0, %s2493_s28  ;;  %216 = vrot.lane.b32.xlu1 %v2623_v23, %s2494_s29  ;;  %vm78_vm4 = vweird.f32 %v70_v21 }
  0x81   :  { %v60_v24 = vpop.xlane.xlu0 %59 }
  0x82   :  { %v69_v25 = vmul.f32 %v2614_v17, %v60_v24 }
  0x84   :  { %v2374_v26 = vpop.eup %2373  ;;  %v71_v27 = vadd.f32 1e-05, %v69_v25 }
  0x85   :  { %v73_v28 = vmul.f32 %v2374_v26, %v70_v21  ;;  %vm79_vm3 = vweird.f32 %v2374_v26 }
  0x86   :  { %2375 = vrsqrt.f32 %v71_v27  ;;  %vm80_vm5 = vmor %vm78_vm4, %vm79_vm3  ;;  %vm88_vm7 = vweird.f32 %v71_v27 }
  0x87   :  { %v74_v29 = vmul.f32 %v2374_v26, %v73_v28 }
  0x89   :  { %v75_v30 = vmul.f32 0.5, %v74_v29 }
  0x8b   :  { %v76_v31 = vsub.f32 1.5, %v75_v30 }
  0x8c   :  { %v2376_v32 = vpop.eup %2375 }
  0x8d   :  { %v83_v33 = vmul.f32 %v2376_v32, %v71_v27  ;;  %v77_v34 = vmul.f32 %v2374_v26, %v76_v31  ;;  %vm89_vm6 = vweird.f32 %v2376_v32 }
  0x8e   :  { %vm90_vm8 = vmor %vm88_vm7, %vm89_vm6 }
  0x8f   :  { %v84_v35 = vmul.f32 %v2376_v32, %v83_v33  ;;  %v81_v37 = vsel %vm80_vm5, %v2374_v26, %v77_v34 }
  0x90   :  { %v92_v40 = vmul.f32 %v81_v37, %v2587_v1 }
  0x91   :  { %v85_v36 = vmul.f32 0.5, %v84_v35 }
  0x92   :  { %v97_v44 = vmul.f32 %v2367_v41, %v92_v40 }
  0x93   :  { %v86_v38 = vsub.f32 1.5, %v85_v36 }
  0x94   :  { %v181_v48 = vpop.permute.xlu0 %180 }
  0x95   :  { %v87_v39 = vmul.f32 %v2376_v32, %v86_v38 }
  0x97   :  { %v91_v42 = vsel %vm90_vm8, %v2376_v32, %v87_v39 }
  0x98   :  { %v93_v43 = vmul.f32 %v91_v42, %v2595_v3 }
  0x9a   :  { %v98_v45 = vmul.f32 %v2367_v41, %v93_v43 }
  0x9c   :  { %v99_v46 = vpack.c.bf16 %v98_v45, %v97_v44 }
  0x9e   :  { %2044 = vmatmul.msk.bf16.vlgmr.msra.gmra.mxu0 %vm54_vm0, %v99_v46 }
  0xd0   :  { %v227_v47 = vpop.permute.xlu2 %226 }
  0xd8   :  { %v175_v49 = vpop.permute.xlu2 %174 }
  0xd9   :  { %v188_v50 = vsel %vm160_vm9, %v186_v16, %v175_v49 }
  0xda   :  { %v190_v51 = vsel %vm163_vm10, %v188_v50, %v181_v48 }
  0xdb   :  { %196 = vrot.lane.b32.xlu1 %v190_v51, %s2495_s15 }
  0xe3   :  { %145 = vrot.lane.b32.xlu1 %v2603_v6, %s2493_s28 }
  0xf0   :  { %v217_v54 = vpop.permute.xlu1 %216 }
 0x11b   :  { %v2639_v52 = vpop.f32.mrf.mxu0 }
 0x11c   :  { %v232_v53 = vmul.f32 %v227_v47, %v2639_v52  ;;  %v222_v57 = vmul.f32 %v217_v54, %v2639_v52  ;;  %v457_v38 = vpack.c.bf16 %v2639_v52, %v2639_v52  ;;  %v2700_v54 = vld [vmem:[%s3235_s3] sm:$0xff] }
 0x11e   :  { %236 = vrot.lane.b32.xlu2 %v232_v53, %s2496_s10  ;;  %v460_v40 = vunpack.c.l.b16 %v457_v38 }
 0x120   :  { %v461_v41 = vpack.c.b16 %v460_v40, %v460_v40 }
 0x123   :  { %v2687_v34 = vpop.f32.mrf.mxu0 }
 0x14d   :  { %v197_v55 = vpop.permute.xlu1 %196 }
 0x14e   :  { %v202_v56 = vmul.f32 %v197_v55, %v2639_v52 }
 0x150   :  { %206 = vrot.lane.b32.xlu0 %v202_v56, %s2497_s16 }
 0x155   :  { %v146_v2 = vpop.permute.xlu1 %145 }
 0x156   :  { %v161_v4 = vsel %vm160_vm9, %v2623_v23, %v146_v2 }
 0x178   :  { %v237_v58 = vpop.permute.xlu2 %236 }
 0x179   :  { %v242_v59 = vadd.f32 %v237_v58, %v222_v57 }
 0x17b   :  { %v266_v60 = vpack.c.bf16 %v242_v59, %v242_v59  ;;  %255 = vrot.lane.b32.xlu2 %v242_v59, %s2498_s18 }
 0x17d   :  { %v269_v61 = vunpack.c.l.b16 %v266_v60 }
 0x17f   :  { %v270_v62 = vpack.c.b16 %v269_v61, %v269_v61 }
 0x181   :  { %271 = vrot.lane.b32.xlu1 %v270_v62, %s2494_s29 }
 0x183   :  { %151 = vrot.lane.b32.xlu2 %v2603_v6, %s2490_s22  ;;  %v136_v6 = vld [vmem:[%s3234_s2 + $0x8] sm:$0xff] }
 0x1c2   :  { %v207_v9 = vpop.permute.xlu0 %206 }
 0x1d5   :  { %v256_v63 = vpop.permute.xlu2 %255 }
 0x1d6   :  { %v267_v0 = vpack.c.bf16 %v256_v63, %v256_v63 }
 0x1d8   :  { %v309_v1 = vunpack.c.l.b16 %v267_v0 }
 0x1da   :  { %v310_v3 = vpack.c.b16 %v309_v1, %v309_v1 }
 0x1dc   :  { %311 = vrot.lane.b32.xlu2 %v310_v3, %s2494_s29 }
 0x1dd   :  { %v152_v5 = vpop.permute.xlu2 %151 }
 0x1de   :  { %v164_v7 = vsel %vm163_vm10, %v161_v4, %v152_v5 }
 0x1df   :  { %v192_v8 = vmul.f32 %v164_v7, %v2639_v52 }
 0x1e1   :  { %v212_v10 = vadd.f32 %v207_v9, %v192_v8 }
 0x1e3   :  { %248 = vrot.lane.b32.xlu1 %v212_v10, %s2496_s10  ;;  %245 = vrot.lane.b32.xlu0 %v212_v10, %s2498_s18  ;;  %v262_v14 = vpack.c.bf16 %v212_v10, %v212_v10 }
 0x1e4   :  { %251 = vrot.lane.b32.xlu2 %v212_v10, %s2499_s19 }
 0x1eb   :  { %170 = vrot.lane.b32.xlu0 %v136_v6, %s2489_s17  ;;  %141 = vrot.lane.b32.xlu1 %v134_v11, %s2489_s17 }
 0x1f3   :  { %176 = vrot.lane.b32.xlu0 %v136_v6, %s2493_s28  ;;  %v272_v12 = vpop.permute.xlu1 %271  ;;  %182 = vrot.lane.b32.xlu1 %v136_v6, %s2490_s22 }
 0x1f4   :  { %v277_v13 = vsel %vm157_vm1, %v272_v12, 0 }
 0x1f5   :  { %286 = vmatpush.bf16.xpose.msra.mxu1 %v277_v13  ;;  %302 = vmatpush.bf16.xpose.msra.mxu2 %v277_v13 }
 0x1fc   :  { %2045 = vmatmul.msk.bf16.vlgmr.msra.gmra.mxu1 %vm157_vm1, %v262_v14 }
 0x236   :  { %v312_v15 = vpop.permute.xlu2 %311 }
 0x237   :  { %v317_v16 = vsel %vm157_vm1, %v312_v15, 0 }
 0x238   :  { %326 = vmatpush.bf16.xpose.msra.mxu3 %v317_v16  ;;  %342 = vmatpush.bf16.xpose.msrb.mxu0 %v317_v16 }
 0x23e   :  { %v252_v18 = vpop.permute.xlu2 %251 }
 0x23f   :  { %v265_v19 = vpack.c.bf16 %v252_v18, %v252_v18 }
 0x241   :  { %2048 = vmatmul.msk.bf16.vlgmr.msrb.gmra.mxu0 %vm157_vm1, %v265_v19 }
 0x255   :  { %v246_v20 = vpop.permute.xlu0 %245  ;;  %v249_v21 = vpop.permute.xlu1 %248 }
 0x256   :  { %v263_v22 = vpack.c.bf16 %v246_v20, %v246_v20  ;;  %v264_v23 = vpack.c.bf16 %v249_v21, %v249_v21 }
 0x258   :  { %2046 = vmatmul.msk.bf16.vlgmr.msra.gmra.mxu2 %vm157_vm1, %v263_v22  ;;  %2047 = vmatmul.msk.bf16.vlgmr.msra.gmra.mxu3 %vm157_vm1, %v264_v23 }
 0x25d   :  { %v171_v24 = vpop.permute.xlu0 %170  ;;  %v142_v25 = vpop.permute.xlu1 %141 }
 0x25e   :  { %v187_v26 = vsel %vm157_vm1, %v136_v6, %v171_v24  ;;  %v2677_v27 = vsel %vm157_vm1, %v134_v11, %v142_v25 }
 0x25f   :  { %228 = vrot.lane.b32.xlu2 %v187_v26, %s2492_s25 }
 0x265   :  { %v177_v28 = vpop.permute.xlu0 %176  ;;  %v183_v29 = vpop.permute.xlu1 %182 }
 0x266   :  { %v189_v30 = vsel %vm160_vm9, %v187_v26, %v177_v28 }
 0x267   :  { %218 = vrot.lane.b32.xlu2 %v2677_v27, %s2494_s29  ;;  %v191_v31 = vsel %vm163_vm10, %v189_v30, %v183_v29 }
 0x268   :  { %198 = vrot.lane.b32.xlu1 %v191_v31, %s2495_s15 }
 0x270   :  { %153 = vrot.lane.b32.xlu1 %v134_v11, %s2490_s22 }
 0x279   :  { %v2685_v32 = vpop.f32.mrf.mxu1 }
 0x281   :  { %v290_v33 = vpop.f32.mrf.mxu1 }
 0x2b9   :  { %v229_v35 = vpop.permute.xlu2 %228 }
 0x2ba   :  { %v233_v36 = vmul.f32 %v229_v35, %v2687_v34 }
 0x2bc   :  { %238 = vrot.lane.b32.xlu0 %v233_v36, %s2496_s10 }
 0x2be   :  { %v2691_v37 = vpop.f32.mrf.mxu0 }
 0x2c1   :  { %v219_v2 = vpop.permute.xlu2 %218 }
 0x2c2   :  { %v223_v3 = vmul.f32 %v219_v2, %v2687_v34 }
 0x2c4   :  { %147 = vrot.lane.b32.xlu0 %v134_v11, %s2493_s28 }
 0x2c6   :  { %v346_v39 = vpop.f32.mrf.mxu0 }
 0x2cc   :  { %462 = vrot.lane.b32.xlu0 %v461_v41, %s2495_s15 }
 0x2da   :  { %v199_v6 = vpop.permute.xlu1 %198 }
 0x2db   :  { %v304_v42 = vpop.f32.mrf.mxu2  ;;  %v328_v43 = vpop.f32.mrf.mxu3  ;;  %v203_v12 = vmul.f32 %v199_v6, %v2687_v34 }
 0x2dc   :  { %v349_v44 = vmul.f32 0.08, %v304_v42  ;;  %v350_v45 = vmul.f32 0.08, %v328_v43  ;;  %v351_v42 = vmul.f32 0.08, %v2691_v37 }
 0x2de   :  { %v353_v46 = vmul.f32 0.033333335, %v349_v44  ;;  %v354_v47 = vmul.f32 0.033333335, %v350_v45 }
 0x2e0   :  { %2377 = vtanh.f32 %v353_v46 }
 0x2e1   :  { %2379 = vtanh.f32 %v354_v47 }
 0x2e2   :  { %v154_v31 = vpop.permute.xlu1 %153 }
 0x2e3   :  { %v306_v48 = vpop.f32.mrf.mxu2  ;;  %v330_v49 = vpop.f32.mrf.mxu3 }
 0x2e6   :  { %v2378_v50 = vpop.eup %2377 }
 0x2e7   :  { %v2380_v51 = vpop.eup %2379  ;;  %v361_v53 = vmul.f32 30.0, %v2378_v50 }
 0x2e8   :  { %v362_v55 = vmul.f32 30.0, %v2380_v51 }
 0x2e9   :  { %v366_v56 = vadd.f32 %v2700_v54, %v361_v53 }
 0x2ea   :  { %v367_v57 = vadd.f32 %v2700_v54, %v362_v55 }
 0x2eb   :  { %v2050_v58 = vadd.f32 -30.0, %v366_v56 }
 0x2ec   :  { %v2051_v59 = vadd.f32 -30.0, %v367_v57 }
 0x2ed   :  { %v375_v60 = vmul.f32 1.442695, %v2050_v58 }
 0x2ee   :  { %v377_v61 = vmul.f32 1.442695, %v2051_v59  ;;  %v348_v59 = vmul.f32 0.08, %v2685_v32 }
 0x2ef   :  { %2381 = vpow2.f32 %v375_v60 }
 0x2f0   :  { %2383 = vpow2.f32 %v377_v61  ;;  %v352_v61 = vmul.f32 0.033333335, %v348_v59 }
 0x2f5   :  { %v2382_v62 = vpop.eup %2381 }
 0x2f6   :  { %v2704_v63 = vpop.eup %2383  ;;  %v384_v0 = vsel %vm157_vm1, %v2382_v62, 0.0 }
 0x2f7   :  { %385 = vadd.xlane.f32.xlu0 %v384_v0  ;;  %v387_v1 = vsel %vm157_vm1, %v2704_v63, 0.0 }
 0x2f8   :  { %388 = vadd.xlane.f32.xlu1 %v387_v1 }
 0x32e   :  { %v239_v4 = vpop.permute.xlu0 %238 }
 0x32f   :  { %v243_v5 = vadd.f32 %v239_v4, %v223_v3 }
 0x331   :  { %v2339_v7 = vpack.i.bf16 %v243_v5, %v2639_v52  ;;  %v577_v8 = vpack.c.bf16 %v243_v5, %v243_v5 }
 0x333   :  { %v580_v9 = vunpack.c.l.b16 %v577_v8  ;;  %2340 = vrot.lane.b32.xlu2 %v2339_v7, %s2498_s18 }
 0x335   :  { %v581_v10 = vpack.c.b16 %v580_v9, %v580_v9 }
 0x336   :  { %v148_v11 = vpop.permute.xlu0 %147 }
 0x337   :  { %582 = vrot.lane.b32.xlu1 %v581_v10, %s2494_s29  ;;  %v162_v30 = vsel %vm160_vm9, %v2677_v27, %v148_v11  ;;  %v355_v27 = vmul.f32 0.033333335, %v351_v42 }
 0x338   :  { %v165_v39 = vsel %vm163_vm10, %v162_v30, %v154_v31 }
 0x339   :  { %v193_v45 = vmul.f32 %v165_v39, %v2687_v34 }
 0x33b   :  { %208 = vrot.lane.b32.xlu2 %v203_v12, %s2497_s16 }
 0x33e   :  { %v463_v13 = vpop.permute.xlu0 %462 }
 0x33f   :  { %v469_v14 = vsel %vm467_vm11, %v463_v13, 0 }
 0x340   :  { %478 = vmatpush.bf16.msrb.mxu1 %v469_v14  ;;  %494 = vmatpush.bf16.msrb.mxu2 %v469_v14 }
 0x36a   :  { %v386_v52 = vpop.xlane.xlu0 %385 }
 0x36b   :  { %2385 = vrcp.f32 %v386_v52  ;;  %v419_v19 = vand.u32 2147483648, %v386_v52  ;;  %v417_v21 = vand.u32 2147483647, %v386_v52  ;;  %vm413_vm13 = vweird.f32 %v386_v52  ;;  %v389_v37 = vpop.xlane.xlu1 %388 }
 0x36c   :  { %2387 = vtanh.f32 %v355_v27  ;;  %v434_v5 = vand.u32 2147483648, %v389_v37  ;;  %vm428_vm3 = vweird.f32 %v389_v37  ;;  %v432_v7 = vand.u32 2147483647, %v389_v37 }
 0x36d   :  { %v420_v23 = vor.u32 1.1754944e-38, %v419_v19  ;;  %vm418_vm15 = vcmp.eq.f32.partialorder %v417_v21, 8.507059e+37 }
 0x36e   :  { %v435_v9 = vor.u32 1.1754944e-38, %v434_v5  ;;  %vm433_vm5 = vcmp.eq.f32.partialorder %v432_v7, 8.507059e+37 }
 0x371   :  { %v2386_v15 = vpop.eup %2385 }
 0x372   :  { %v409_v16 = vmul.f32 %v2386_v15, %v386_v52  ;;  %vm414_vm12 = vweird.f32 %v2386_v15  ;;  %v2388_v48 = vpop.eup %2387 }
 0x373   :  { %vm415_vm14 = vmor %vm413_vm13, %vm414_vm12  ;;  %v363_v49 = vmul.f32 30.0, %v2388_v48 }
 0x374   :  { %v410_v18 = vsub.f32 1.0, %v409_v16 }
 0x375   :  { %v368_v50 = vadd.f32 %v2700_v54, %v363_v49 }
 0x376   :  { %v411_v20 = vmul.f32 %v2386_v15, %v410_v18 }
 0x377   :  { %v2052_v55 = vadd.f32 -30.0, %v368_v50 }
 0x378   :  { %v412_v22 = vadd.f32 %v2386_v15, %v411_v20 }
 0x379   :  { %v379_v56 = vmul.f32 1.442695, %v2052_v55 }
 0x37a   :  { %v416_v24 = vsel %vm415_vm14, %v2386_v15, %v412_v22 }
 0x37b   :  { %v421_v25 = vsel %vm418_vm15, %v420_v23, %v416_v24  ;;  %2389 = vpow2.f32 %v379_v56 }
 0x37c   :  { %v422_v26 = vmul.f32 %v2382_v62, %v421_v25  ;;  %2391 = vrcp.f32 %v389_v37 }
 0x37d   :  { %2393 = vtanh.f32 %v352_v61 }
 0x37e   :  { %v454_v28 = vpack.c.bf16 %v422_v26, %v422_v26 }
 0x380   :  { %2054 = vmatmul.msk.bf16.vlgmr.msrb.gmra.mxu2 %vm157_vm1, %v454_v28 }
 0x381   :  { %v2734_v57 = vpop.eup %2389 }
 0x382   :  { %v390_v58 = vsel %vm157_vm1, %v2734_v57, 0.0  ;;  %v2392_v60 = vpop.eup %2391 }
 0x383   :  { %v424_v62 = vmul.f32 %v2392_v60, %v389_v37  ;;  %v2394_v2 = vpop.eup %2393  ;;  %vm429_vm2 = vweird.f32 %v2392_v60 }
 0x384   :  { %v360_v4 = vmul.f32 30.0, %v2394_v2  ;;  %vm430_vm4 = vmor %vm428_vm3, %vm429_vm2  ;;  %v2061_v2 = vld [vmem:[%s3235_s3 + $0x8] sm:$0xff] }
 0x385   :  { %v425_v0 = vsub.f32 1.0, %v424_v62 }
 0x386   :  { %v365_v32 = vadd.f32 %v2700_v54, %v360_v4 }
 0x387   :  { %v426_v1 = vmul.f32 %v2392_v60, %v425_v0 }
 0x388   :  { %v2049_v6 = vadd.f32 -30.0, %v365_v32 }
 0x389   :  { %v427_v3 = vadd.f32 %v2392_v60, %v426_v1 }
 0x38a   :  { %v373_v14 = vmul.f32 1.442695, %v2049_v6 }
 0x38b   :  { %v431_v8 = vsel %vm430_vm4, %v2392_v60, %v427_v3 }
 0x38c   :  { %v436_v10 = vsel %vm433_vm5, %v435_v9, %v431_v8  ;;  %2395 = vpow2.f32 %v373_v14 }
 0x38d   :  { %v2341_v29 = vpop.permute.xlu2 %2340  ;;  %v437_v11 = vmul.f32 %v2704_v63, %v436_v10 }
 0x38e   :  { %v2343_v33 = vunpack.i.h.bf16 %v2341_v29  ;;  %v2342_v35 = vunpack.i.l.bf16 %v2341_v29 }
 0x38f   :  { %v455_v52 = vpack.c.bf16 %v437_v11, %v437_v11 }
 0x390   :  { %v578_v36 = vpack.c.bf16 %v2343_v33, %v2343_v33  ;;  %v458_v38 = vpack.c.bf16 %v2342_v35, %v2342_v35 }
 0x392   :  { %v620_v40 = vunpack.c.l.b16 %v578_v36  ;;  %v501_v41 = vunpack.c.l.b16 %v458_v38  ;;  %v2396_v15 = vpop.eup %2395 }
 0x393   :  { %v381_v16 = vsel %vm157_vm1, %v2396_v15, 0.0 }
 0x394   :  { %v621_v43 = vpack.c.b16 %v620_v40, %v620_v40  ;;  %v502_v44 = vpack.c.b16 %v501_v41, %v501_v41 }
 0x395   :  { %v209_v46 = vpop.permute.xlu2 %208 }
 0x396   :  { %v2722_v47 = vadd.f32 %v209_v46, %v193_v45  ;;  %622 = vrot.lane.b32.xlu0 %v621_v43, %s2494_s29  ;;  %503 = vrot.lane.b32.xlu2 %v502_v44, %s2495_s15 }
 0x398   :  { %562 = vrot.lane.b32.xlu1 %v2722_v47, %s2499_s19  ;;  %v573_v60 = vpack.c.bf16 %v2722_v47, %v2722_v47 }
 0x39e   :  { %559 = vrot.lane.b32.xlu0 %v2722_v47, %s2496_s10 }
 0x3a6   :  { %570 = vrot.lane.b32.xlu0 %v2687_v34, %s2498_s18 }
 0x3a9   :  { %v583_v51 = vpop.permute.xlu1 %582 }
 0x3aa   :  { %v588_v53 = vsel %vm157_vm1, %v583_v51, 0 }
 0x3ab   :  { %597 = vmatpush.bf16.xpose.msra.mxu1 %v588_v53  ;;  %613 = vmatpush.bf16.xpose.msra.mxu2 %v588_v53 }
 0x3bf   :  { %391 = vadd.xlane.f32.xlu2 %v390_v58 }
 0x3d7   :  { %556 = vrot.lane.b32.xlu2 %v2722_v47, %s2498_s18 }
 0x3f0   :  { %v504_v12 = vpop.permute.xlu2 %503 }
 0x3f1   :  { %v509_v13 = vsel %vm467_vm11, %v504_v12, 0 }
 0x3f2   :  { %518 = vmatpush.bf16.msrb.mxu3 %v509_v13  ;;  %534 = vmatpush.bf16.msra.mxu0 %v509_v13 }
 0x3f5   :  { %2055 = vmatmul.msk.bf16.vlgmr.msrb.gmra.mxu3 %vm157_vm1, %v455_v52 }
 0x400   :  { %382 = vadd.xlane.f32.xlu2 %v381_v16 }
 0x403   :  { %v2746_v54 = vpop.f32.mrf.mxu2 }
 0x408   :  { %v623_v18 = vpop.permute.xlu0 %622 }
 0x409   :  { %v628_v19 = vsel %vm157_vm1, %v623_v18, 0 }
 0x40a   :  { %637 = vmatpush.bf16.xpose.msra.mxu3 %v628_v19  ;;  %653 = vmatpush.bf16.xpose.msrb.mxu0 %v628_v19  ;;  %v563_v41 = vpop.permute.xlu1 %562 }
 0x40b   :  { %v498_v63 = vpop.f32.mrf.mxu2  ;;  %v576_v42 = vpack.c.bf16 %v563_v41, %v563_v41 }
 0x410   :  { %v560_v20 = vpop.permute.xlu0 %559 }
 0x411   :  { %v575_v21 = vpack.c.bf16 %v560_v20, %v560_v20 }
 0x413   :  { %2059 = vmatmul.msk.bf16.vlgmr.msra.gmra.mxu3 %vm157_vm1, %v575_v21 }
 0x432   :  { %v392_v22 = vpop.xlane.xlu2 %391 }
 0x433   :  { %2397 = vrcp.f32 %v392_v22  ;;  %v449_v29 = vand.u32 2147483648, %v392_v22  ;;  %v447_v31 = vand.u32 2147483647, %v392_v22  ;;  %vm443_vm7 = vweird.f32 %v392_v22 }
 0x435   :  { %v450_v35 = vor.u32 1.1754944e-38, %v449_v29  ;;  %vm448_vm12 = vcmp.eq.f32.partialorder %v447_v31, 8.507059e+37  ;;  %v769_v29 = vpack.c.bf16 %v2687_v34, %v2687_v34 }
 0x437   :  { %v772_v31 = vunpack.c.l.b16 %v769_v29 }
 0x439   :  { %v2398_v23 = vpop.eup %2397 }
 0x43a   :  { %v439_v24 = vmul.f32 %v2398_v23, %v392_v22  ;;  %v557_v25 = vpop.permute.xlu2 %556  ;;  %vm444_vm6 = vweird.f32 %v2398_v23 }
 0x43b   :  { %v574_v26 = vpack.c.bf16 %v557_v25, %v557_v25  ;;  %vm445_vm8 = vmor %vm443_vm7, %vm444_vm6 }
 0x43c   :  { %v440_v28 = vsub.f32 1.0, %v439_v24 }
 0x43d   :  { %2058 = vmatmul.msk.bf16.vlgmr.msra.gmra.mxu2 %vm157_vm1, %v574_v26 }
 0x43e   :  { %v441_v30 = vmul.f32 %v2398_v23, %v440_v28 }
 0x440   :  { %v442_v33 = vadd.f32 %v2398_v23, %v441_v30 }
 0x442   :  { %v446_v36 = vsel %vm445_vm8, %v2398_v23, %v442_v33 }
 0x443   :  { %v451_v38 = vsel %vm448_vm12, %v450_v35, %v446_v36  ;;  %v773_v35 = vpack.c.b16 %v772_v31, %v772_v31  ;;  %v571_v36 = vpop.permute.xlu0 %570 }
 0x444   :  { %v452_v39 = vmul.f32 %v2734_v57, %v451_v38  ;;  %v770_v38 = vpack.c.bf16 %v571_v36, %v571_v36 }
 0x446   :  { %v456_v40 = vpack.c.bf16 %v452_v39, %v452_v39  ;;  %v812_v39 = vunpack.c.l.b16 %v770_v38 }
 0x448   :  { %2056 = vmatmul.msk.bf16.vlgmr.msra.gmra.mxu0 %vm157_vm1, %v456_v40  ;;  %v813_v41 = vpack.c.b16 %v812_v39, %v812_v39 }
 0x458   :  { %2060 = vmatmul.msk.bf16.vlgmr.msrb.gmra.mxu0 %vm157_vm1, %v576_v42 }
 0x473   :  { %v383_v43 = vpop.xlane.xlu2 %382 }
 0x474   :  { %2399 = vrcp.f32 %v383_v43  ;;  %v404_v37 = vand.u32 2147483648, %v383_v43  ;;  %v402_v49 = vand.u32 2147483647, %v383_v43  ;;  %vm398_vm14 = vweird.f32 %v383_v43 }
 0x476   :  { %v405_v53 = vor.u32 1.1754944e-38, %v404_v37  ;;  %vm403_vm2 = vcmp.eq.f32.partialorder %v402_v49, 8.507059e+37 }
 0x478   :  { %v2754_v44 = vpop.f32.mrf.mxu3 }
 0x47a   :  { %v2400_v45 = vpop.eup %2399 }
 0x47b   :  { %v394_v46 = vmul.f32 %v2400_v45, %v383_v43  ;;  %vm399_vm13 = vweird.f32 %v2400_v45 }
 0x47c   :  { %vm400_vm15 = vmor %vm398_vm14, %vm399_vm13 }
 0x47d   :  { %v395_v27 = vsub.f32 1.0, %v394_v46 }
 0x47f   :  { %v396_v48 = vmul.f32 %v2400_v45, %v395_v27 }
 0x480   :  { %v522_v50 = vpop.f32.mrf.mxu3 }
 0x481   :  { %v397_v51 = vadd.f32 %v2400_v45, %v396_v48 }
 0x483   :  { %v401_v55 = vsel %vm400_vm15, %v2400_v45, %v397_v51 }
 0x484   :  { %v406_v56 = vsel %vm403_vm2, %v405_v53, %v401_v55 }
 0x485   :  { %v407_v57 = vmul.f32 %v2396_v15, %v406_v56 }
 0x487   :  { %v453_v58 = vpack.c.bf16 %v407_v57, %v407_v57 }
 0x489   :  { %2053 = vmatmul.msk.bf16.vlgmr.msrb.gmra.mxu1 %vm157_vm1, %v453_v58 }
 0x496   :  { %v639_v59 = vpop.f32.mrf.mxu3 }
 0x497   :  { %v661_v61 = vmul.f32 0.08, %v639_v59 }
 0x499   :  { %v665_v62 = vmul.f32 0.033333335, %v661_v61  ;;  %2057 = vmatmul.msk.bf16.vlgmr.msra.gmra.mxu1 %vm157_vm1, %v573_v60 }
 0x49b   :  { %2401 = vtanh.f32 %v665_v62 }
 0x49e   :  { %v641_v0 = vpop.f32.mrf.mxu3 }
 0x4a1   :  { %v2402_v1 = vpop.eup %2401 }
 0x4a2   :  { %v673_v3 = vmul.f32 30.0, %v2402_v1 }
 0x4a4   :  { %v679_v4 = vadd.f32 %v2061_v2, %v673_v3 }
 0x4a6   :  { %v2064_v5 = vadd.f32 -30.0, %v679_v4 }
 0x4a8   :  { %v689_v7 = vmul.f32 1.442695, %v2064_v5 }
 0x4aa   :  { %2403 = vpow2.f32 %v689_v7 }
 0x4b0   :  { %v2763_v8 = vpop.eup %2403 }
 0x4b1   :  { %v699_v47 = vsel %vm157_vm1, %v2763_v8, 0.0 }
 0x4b2   :  { %700 = vadd.xlane.f32.xlu0 %v699_v47 }
 0x4c0   :  { %v615_v32 = vpop.f32.mrf.mxu2 }
 0x4c1   :  { %v660_v9 = vmul.f32 0.08, %v615_v32 }
 0x4c3   :  { %v664_v10 = vmul.f32 0.033333335, %v660_v9 }
 0x4c5   :  { %2405 = vtanh.f32 %v664_v10  ;;  %v2767_v6 = vpop.f32.mrf.mxu0 }
 0x4c8   :  { %v617_v11 = vpop.f32.mrf.mxu2 }
 0x4cb   :  { %v2406_v12 = vpop.eup %2405 }
 0x4cc   :  { %v672_v13 = vmul.f32 30.0, %v2406_v12 }
 0x4cd   :  { %v538_v14 = vpop.f32.mrf.mxu0 }
 0x4ce   :  { %v678_v52 = vadd.f32 %v2061_v2, %v672_v13 }
 0x4d0   :  { %v2063_v15 = vadd.f32 -30.0, %v678_v52 }
 0x4d2   :  { %v687_v16 = vmul.f32 1.442695, %v2063_v15 }
 0x4d4   :  { %2407 = vpow2.f32 %v687_v16 }
 0x4d5   :  { %v655_v18 = vpop.f32.mrf.mxu0 }
 0x4d6   :  { %v662_v19 = vmul.f32 0.08, %v655_v18 }
 0x4d8   :  { %v666_v63 = vmul.f32 0.033333335, %v662_v19 }
 0x4da   :  { %v2769_v20 = vpop.eup %2407  ;;  %2409 = vtanh.f32 %v666_v63 }
 0x4db   :  { %v696_v21 = vsel %vm157_vm1, %v2769_v20, 0.0 }
 0x4dc   :  { %697 = vadd.xlane.f32.xlu1 %v696_v21 }
 0x4dd   :  { %v657_v22 = vpop.f32.mrf.mxu0 }
 0x4e0   :  { %v2410_v23 = vpop.eup %2409 }
 0x4e1   :  { %v674_v24 = vmul.f32 30.0, %v2410_v23 }
 0x4e3   :  { %v680_v25 = vadd.f32 %v2061_v2, %v674_v24 }
 0x4e5   :  { %v2065_v26 = vadd.f32 -30.0, %v680_v25 }
 0x4e7   :  { %v691_v28 = vmul.f32 1.442695, %v2065_v26 }
 0x4e9   :  { %2411 = vpow2.f32 %v691_v28 }
 0x4ef   :  { %v2775_v30 = vpop.eup %2411 }
 0x4f0   :  { %v702_v33 = vsel %vm157_vm1, %v2775_v30, 0.0 }
 0x4f1   :  { %703 = vadd.xlane.f32.xlu2 %v702_v33 }
 0x4f5   :  { %774 = vrot.lane.b32.xlu1 %v773_v35, %s2495_s15 }
 0x506   :  { %v2780_v40 = vpop.f32.mrf.mxu1 }
 0x509   :  { %814 = vrot.lane.b32.xlu2 %v813_v41, %s2495_s15  ;;  %s2505_s15 = smov 128  }
 0x50e   :  { %v482_v42 = vpop.f32.mrf.mxu1 }
 0x516   :  { %v599_v34 = vpop.f32.mrf.mxu1 }
 0x517   :  { %v659_v43 = vmul.f32 0.08, %v599_v34 }
 0x519   :  { %v663_v45 = vmul.f32 0.033333335, %v659_v43 }
 0x51b   :  { %2413 = vtanh.f32 %v663_v45 }
 0x51e   :  { %v601_v46 = vpop.f32.mrf.mxu1 }
 0x521   :  { %v2414_v27 = vpop.eup %2413 }
 0x522   :  { %v671_v37 = vmul.f32 30.0, %v2414_v27 }
 0x524   :  { %v677_v48 = vadd.f32 %v2061_v2, %v671_v37 }
 0x525   :  { %v701_v55 = vpop.xlane.xlu0 %700 }
 0x526   :  { %v2062_v49 = vadd.f32 -30.0, %v677_v48  ;;  %v746_v32 = vand.u32 2147483648, %v701_v55  ;;  %vm740_vm8 = vweird.f32 %v701_v55  ;;  %v744_v9 = vand.u32 2147483647, %v701_v55 }
 0x528   :  { %v685_v50 = vmul.f32 1.442695, %v2062_v49  ;;  %v747_v13 = vor.u32 1.1754944e-38, %v746_v32  ;;  %vm745_vm13 = vcmp.eq.f32.partialorder %v744_v9, 8.507059e+37 }
 0x52a   :  { %2415 = vpow2.f32 %v685_v50 }
 0x52b   :  { %2417 = vrcp.f32 %v701_v55 }
 0x530   :  { %v2783_v51 = vpop.eup %2415 }
 0x531   :  { %v693_v53 = vsel %vm157_vm1, %v2783_v51, 0.0  ;;  %v2418_v57 = vpop.eup %2417 }
 0x532   :  { %694 = vadd.xlane.f32.xlu0 %v693_v53  ;;  %v736_v58 = vmul.f32 %v2418_v57, %v701_v55  ;;  %vm741_vm6 = vweird.f32 %v2418_v57 }
 0x533   :  { %vm742_vm12 = vmor %vm740_vm8, %vm741_vm6 }
 0x534   :  { %v737_v61 = vsub.f32 1.0, %v736_v58 }
 0x536   :  { %v738_v1 = vmul.f32 %v2418_v57, %v737_v61 }
 0x538   :  { %v739_v7 = vadd.f32 %v2418_v57, %v738_v1 }
 0x53a   :  { %v743_v12 = vsel %vm742_vm12, %v2418_v57, %v739_v7 }
 0x53b   :  { %v748_v15 = vsel %vm745_vm13, %v747_v13, %v743_v12 }
 0x53c   :  { %v749_v63 = vmul.f32 %v2763_v8, %v748_v15 }
 0x53e   :  { %v767_v25 = vpack.c.bf16 %v749_v63, %v749_v63 }
 0x54f   :  { %v698_v56 = vpop.xlane.xlu1 %697 }
 0x550   :  { %2419 = vrcp.f32 %v698_v56  ;;  %v731_v3 = vand.u32 2147483648, %v698_v56  ;;  %vm725_vm4 = vweird.f32 %v698_v56  ;;  %v729_v4 = vand.u32 2147483647, %v698_v56 }
 0x552   :  { %v732_v47 = vor.u32 1.1754944e-38, %v731_v3  ;;  %vm730_vm7 = vcmp.eq.f32.partialorder %v729_v4, 8.507059e+37 }
 0x556   :  { %v2420_v59 = vpop.eup %2419 }
 0x557   :  { %v721_v60 = vmul.f32 %v2420_v59, %v698_v56  ;;  %vm726_vm3 = vweird.f32 %v2420_v59 }
 0x558   :  { %vm727_vm5 = vmor %vm725_vm4, %vm726_vm3 }
 0x559   :  { %v722_v62 = vsub.f32 1.0, %v721_v60 }
 0x55b   :  { %v723_v0 = vmul.f32 %v2420_v59, %v722_v62 }
 0x55d   :  { %v724_v2 = vadd.f32 %v2420_v59, %v723_v0 }
 0x55f   :  { %v728_v5 = vsel %vm727_vm5, %v2420_v59, %v724_v2 }
 0x560   :  { %v733_v10 = vsel %vm730_vm7, %v732_v47, %v728_v5 }
 0x561   :  { %v734_v14 = vmul.f32 %v2769_v20, %v733_v10 }
 0x563   :  { %v766_v18 = vpack.c.bf16 %v734_v14, %v734_v14 }
 0x564   :  { %v704_v11 = vpop.xlane.xlu2 %703 }
 0x565   :  { %2421 = vrcp.f32 %v704_v11  ;;  %v761_v20 = vand.u32 2147483648, %v704_v11  ;;  %v759_v28 = vand.u32 2147483647, %v704_v11  ;;  %vm755_vm15 = vweird.f32 %v704_v11 }
 0x567   :  { %v775_v52 = vpop.permute.xlu1 %774  ;;  %v762_v8 = vor.u32 1.1754944e-38, %v761_v20  ;;  %vm760_vm3 = vcmp.eq.f32.partialorder %v759_v28, 8.507059e+37 }
 0x568   :  { %v780_v16 = vsel %vm467_vm11, %v775_v52, 0 }
 0x569   :  { %789 = vmatpush.bf16.msrb.mxu1 %v780_v16  ;;  %805 = vmatpush.bf16.msrb.mxu2 %v780_v16 }
 0x56b   :  { %v2422_v19 = vpop.eup %2421 }
 0x56c   :  { %v751_v21 = vmul.f32 %v2422_v19, %v704_v11  ;;  %v815_v22 = vpop.permute.xlu2 %814  ;;  %2067 = vmatmul.msk.bf16.vlgmr.msrb.gmra.mxu2 %vm157_vm1, %v766_v18  ;;  %vm756_vm14 = vweird.f32 %v2422_v19 }
 0x56d   :  { %v820_v23 = vsel %vm467_vm11, %v815_v22, 0  ;;  %vm757_vm2 = vmor %vm755_vm15, %vm756_vm14 }
 0x56e   :  { %v752_v24 = vsub.f32 1.0, %v751_v21  ;;  %829 = vmatpush.bf16.msrb.mxu3 %v820_v23  ;;  %845 = vmatpush.bf16.msra.mxu0 %v820_v23 }
 0x570   :  { %v753_v26 = vmul.f32 %v2422_v19, %v752_v24 }
 0x571   :  { %2068 = vmatmul.msk.bf16.vlgmr.msrb.gmra.mxu3 %vm157_vm1, %v767_v25 }
 0x572   :  { %v754_v29 = vadd.f32 %v2422_v19, %v753_v26 }
 0x574   :  { %v758_v31 = vsel %vm757_vm2, %v2422_v19, %v754_v29 }
 0x575   :  { %v763_v33 = vsel %vm760_vm3, %v762_v8, %v758_v31 }
 0x576   :  { %v764_v35 = vmul.f32 %v2775_v30, %v763_v33 }
 0x578   :  { %v768_v36 = vpack.c.bf16 %v764_v35, %v764_v35 }
 0x57a   :  { %2069 = vmatmul.msk.bf16.vlgmr.msra.gmra.mxu0 %vm157_vm1, %v768_v36  ;;  %v2368_v36 = vld [vmem:[%s3243_s11] ss:$0 sm:$0xff]  ;;  %s2022_s11 = sshll.u32 %s2504_s30, 4  ;;  %s2023_s11 = int_to_ptr.vmem [resolvable:$true] %s2022_s11 }
 0x5a5   :  { %v695_v38 = vpop.xlane.xlu0 %694 }
 0x5a6   :  { %2423 = vrcp.f32 %v695_v38  ;;  %v716_v34 = vand.u32 2147483648, %v695_v38  ;;  %v714_v45 = vand.u32 2147483647, %v695_v38  ;;  %vm710_vm4 = vweird.f32 %v695_v38 }
 0x5a8   :  { %v717_v27 = vor.u32 1.1754944e-38, %v716_v34  ;;  %vm715_vm6 = vcmp.eq.f32.partialorder %v714_v45, 8.507059e+37  ;;  %v2461_v45 = vld [vmem:[%s3232_s0] sm:$0xff] }
 0x5ac   :  { %v2424_v39 = vpop.eup %2423 }
 0x5ad   :  { %v706_v41 = vmul.f32 %v2424_v39, %v695_v38  ;;  %vm711_vm11 = vweird.f32 %v2424_v39 }
 0x5ae   :  { %vm712_vm5 = vmor %vm710_vm4, %vm711_vm11  ;;  %vm1016_vm4 = vcmask 31744  }
 0x5af   :  { %v707_v42 = vsub.f32 1.0, %v706_v41 }
 0x5b1   :  { %v708_v43 = vmul.f32 %v2424_v39, %v707_v42 }
 0x5b3   :  { %v709_v46 = vadd.f32 %v2424_v39, %v708_v43 }
 0x5b5   :  { %v713_v37 = vsel %vm712_vm5, %v2424_v39, %v709_v46 }
 0x5b6   :  { %v718_v48 = vsel %vm715_vm6, %v717_v27, %v713_v37 }
 0x5b7   :  { %v719_v30 = vmul.f32 %v2783_v51, %v718_v48 }
 0x5b9   :  { %v765_v49 = vpack.c.bf16 %v719_v30, %v719_v30 }
 0x5bb   :  { %2066 = vmatmul.msk.bf16.vlgmr.msrb.gmra.mxu1 %vm157_vm1, %v765_v49 }
 0x5ef   :  { %v807_v50 = vpop.f32.mrf.mxu2 }
 0x5f0   :  { %v2344_v53 = vpack.i.bf16 %v807_v50, %v2746_v54  ;;  %v2287_v54 = vld [vmem:[%s3237_s5 + $0x8] sm:$0xff] }
 0x5f1   :  { %892 = vmatpush.bf16.msra.mxu1 %v2287_v54  ;;  %v2290_v54 = vld [vmem:[%s3239_s7] sm:$0xff] }
 0x5f2   :  { %2345 = vrot.lane.b32.xlu0 %v2344_v53, %s2489_s17  ;;  %v2462_v53 = vld [vmem:[%s3232_s0 + $0x8] sm:$0xff] }
 0x5f4   :  { %v831_v55 = vpop.f32.mrf.mxu3 }
 0x5f5   :  { %v2349_v56 = vpack.i.bf16 %v831_v55, %v2754_v44  ;;  %v2286_v44 = vld [vmem:[%s3237_s5] sm:$0xff] }
 0x5f6   :  { %893 = vmatpush.bf16.msra.mxu1 %v2286_v44  ;;  %v2292_v44 = vld [vmem:[%s3240_s8] sm:$0xff] }
 0x5f7   :  { %2350 = vrot.lane.b32.xlu1 %v2349_v56, %s2493_s28  ;;  %v809_v57 = vpop.f32.mrf.mxu2  ;;  %v847_v58 = vpop.f32.mrf.mxu0 }
 0x5f8   :  { %v2354_v59 = vpack.i.bf16 %v847_v58, %v2767_v6  ;;  %v2289_v58 = vld [vmem:[%s3238_s6 + $0x8] sm:$0xff] }
 0x5f9   :  { %1008 = vmatpush.bf16.msra.mxu2 %v2289_v58 }
 0x5fa   :  { %2355 = vrot.lane.b32.xlu2 %v2354_v59, %s2490_s22  ;;  %v2291_v59 = vld [vmem:[%s3239_s7 + $0x8] sm:$0xff] }
 0x5fb   :  { %1136 = vmatpush.bf16.msra.mxu3 %v2291_v59 }
 0x5fc   :  { %v833_v51 = vpop.f32.mrf.mxu3 }
 0x5fd   :  { %v2293_v51 = vld [vmem:[%s3240_s8 + $0x8] sm:$0xff] }
 0x5fe   :  { %1166 = vmatpush.bf16.msrb.mxu0 %v2293_v51 }
 0x5ff   :  { %v849_v60 = vpop.f32.mrf.mxu0  ;;  %1137 = vmatpush.bf16.msra.mxu3 %v2290_v54 }
 0x602   :  { %1167 = vmatpush.bf16.msrb.mxu0 %v2292_v44 }
 0x638   :  { %v791_v61 = vpop.f32.mrf.mxu1 }
 0x640   :  { %v793_v62 = vpop.f32.mrf.mxu1 }
 0x641   :  { %v2288_v62 = vld [vmem:[%s3238_s6] sm:$0xff] }
 0x642   :  { %1009 = vmatpush.bf16.msra.mxu2 %v2288_v62 }
 0x654   :  { %v2356_v6 = vpop.permute.xlu2 %2355 }
 0x655   :  { %v2358_v7 = vunpack.i.h.bf16 %v2356_v6  ;;  %v2357_v47 = vunpack.i.l.bf16 %v2356_v6 }
 0x664   :  { %v2346_v0 = vpop.permute.xlu0 %2345 }
 0x665   :  { %v2348_v1 = vunpack.i.h.bf16 %v2346_v0  ;;  %v2347_v2 = vunpack.i.l.bf16 %v2346_v0 }
 0x667   :  { %v552_v32 = vsel %vm157_vm1, %v2780_v40, %v2347_v2  ;;  %v863_v9 = vsel %vm157_vm1, %v791_v61, %v2348_v1  ;;  %v2299_v1 = vld [vmem:[%s3239_s7 + $0x18] sm:$0xff] }
 0x668   :  { %v2301_v2 = vld [vmem:[%s3240_s8 + $0x18] sm:$0xff]  ;;  %1352 = vmatpush.bf16.msrb.mxu2 %v2299_v1 }
 0x669   :  { %v2351_v3 = vpop.permute.xlu1 %2350  ;;  %1383 = vmatpush.bf16.msrb.mxu3 %v2301_v2 }
 0x66a   :  { %v2353_v4 = vunpack.i.h.bf16 %v2351_v3  ;;  %v2352_v5 = vunpack.i.l.bf16 %v2351_v3  ;;  %v2298_v3 = vld [vmem:[%s3239_s7 + $0x10] sm:$0xff] }
 0x66c   :  { %v864_v10 = vsel %vm160_vm9, %v863_v9, %v2353_v4  ;;  %v553_v11 = vsel %vm160_vm9, %v552_v32, %v2352_v5  ;;  %v2300_v4 = vld [vmem:[%s3240_s8 + $0x10] sm:$0xff]  ;;  %1353 = vmatpush.bf16.msrb.mxu2 %v2298_v3 }
 0x66d   :  { %v865_v12 = vsel %vm163_vm10, %v864_v10, %v2358_v7  ;;  %v554_v13 = vsel %vm163_vm10, %v553_v11, %v2357_v47  ;;  %1384 = vmatpush.bf16.msrb.mxu3 %v2300_v4 }
 0x66e   :  { %v866_v14 = vpack.c.bf16 %v865_v12, %v554_v13 }
 0x670   :  { %2078 = vmatmul.msk.bf16.vlgmr.msra.gmra.mxu1 %vm54_vm0, %v866_v14 }
 0x6ed   :  { %v895_v52 = vpop.f32.mrf.mxu1 }
 0x6ee   :  { %v901_v15 = vmul.f32 %v895_v52, %v895_v52 }
 0x6f0   :  { %v903_v16 = vsel %vm54_vm0, %v901_v15, 0.0 }
 0x6f1   :  { %904 = vadd.xlane.f32.xlu1 %v903_v16 }
 0x6f5   :  { %v897_v18 = vpop.f32.mrf.mxu1 }
 0x6f6   :  { %v902_v40 = vmul.f32 %v897_v18, %v897_v18 }
 0x6f8   :  { %v906_v19 = vsel %vm54_vm0, %v902_v40, 0.0 }
 0x6f9   :  { %907 = vadd.xlane.f32.xlu0 %v906_v19  ;;  %v2369_v19 = vld [vmem:[%s3244_s12] ss:$0 sm:$0xff] }
 0x764   :  { %v905_v63 = vpop.xlane.xlu1 %904 }
 0x765   :  { %v909_v21 = vmul.f32 %v905_v63, %v2614_v17 }
 0x767   :  { %v911_v22 = vadd.f32 1e-05, %v909_v21 }
 0x769   :  { %2425 = vrsqrt.f32 %v911_v22  ;;  %vm919_vm9 = vweird.f32 %v911_v22 }
 0x76c   :  { %v908_v23 = vpop.xlane.xlu0 %907 }
 0x76d   :  { %v910_v24 = vmul.f32 %v908_v23, %v2614_v17 }
 0x76f   :  { %v2426_v20 = vpop.eup %2425  ;;  %v912_v25 = vadd.f32 1e-05, %v910_v24 }
 0x770   :  { %v914_v26 = vmul.f32 %v2426_v20, %v911_v22  ;;  %vm920_vm1 = vweird.f32 %v2426_v20 }
 0x771   :  { %2427 = vrsqrt.f32 %v912_v25  ;;  %vm921_vm10 = vmor %vm919_vm9, %vm920_vm1  ;;  %vm929_vm8 = vweird.f32 %v912_v25 }
 0x772   :  { %v915_v28 = vmul.f32 %v2426_v20, %v914_v26  ;;  %v2308_v26 = vld [vmem:[%s3240_s8 + $0x20] sm:$0xff] }
 0x774   :  { %v916_v29 = vmul.f32 0.5, %v915_v28 }
 0x776   :  { %v917_v8 = vsub.f32 1.5, %v916_v29 }
 0x777   :  { %v2428_v31 = vpop.eup %2427 }
 0x778   :  { %v918_v33 = vmul.f32 %v2426_v20, %v917_v8  ;;  %v924_v35 = vmul.f32 %v2428_v31, %v912_v25  ;;  %vm930_vm7 = vweird.f32 %v2428_v31 }
 0x779   :  { %vm931_vm12 = vmor %vm929_vm8, %vm930_vm7 }
 0x77a   :  { %v922_v38 = vsel %vm921_vm10, %v2426_v20, %v918_v33  ;;  %v925_v39 = vmul.f32 %v2428_v31, %v924_v35  ;;  %v2309_v20 = vld [vmem:[%s3240_s8 + $0x28] sm:$0xff] }
 0x77b   :  { %v933_v41 = vmul.f32 %v922_v38, %v895_v52 }
 0x77c   :  { %v926_v42 = vmul.f32 0.5, %v925_v39 }
 0x77d   :  { %v938_v34 = vmul.f32 %v2368_v36, %v933_v41 }
 0x77e   :  { %v927_v43 = vsub.f32 1.5, %v926_v42 }
 0x77f   :  { %v2827_v46 = vadd.f32 %v2461_v45, %v938_v34 }
 0x780   :  { %v928_v27 = vmul.f32 %v2428_v31, %v927_v43 }
 0x781   :  { %v943_v37 = vmul.f32 %v2827_v46, %v2827_v46 }
 0x782   :  { %v932_v48 = vsel %vm931_vm12, %v2428_v31, %v928_v27 }
 0x783   :  { %v934_v30 = vmul.f32 %v932_v48, %v897_v18  ;;  %v945_v49 = vsel %vm54_vm0, %v943_v37, 0.0 }
 0x784   :  { %946 = vadd.xlane.f32.xlu2 %v945_v49 }
 0x785   :  { %v939_v50 = vmul.f32 %v2368_v36, %v934_v30 }
 0x787   :  { %v2835_v55 = vadd.f32 %v2462_v53, %v939_v50 }
 0x789   :  { %v944_v56 = vmul.f32 %v2835_v55, %v2835_v55 }
 0x78b   :  { %v948_v57 = vsel %vm54_vm0, %v944_v56, 0.0 }
 0x78c   :  { %949 = vadd.xlane.f32.xlu1 %v948_v57 }
 0x7f7   :  { %v947_v60 = vpop.xlane.xlu2 %946 }
 0x7f8   :  { %v951_v61 = vmul.f32 %v947_v60, %v2614_v17 }
 0x7fa   :  { %v953_v0 = vadd.f32 1e-05, %v951_v61 }
 0x7fc   :  { %2429 = vrsqrt.f32 %v953_v0  ;;  %vm961_vm14 = vweird.f32 %v953_v0 }
 0x7ff   :  { %v950_v6 = vpop.xlane.xlu1 %949 }
 0x800   :  { %v952_v5 = vmul.f32 %v950_v6, %v2614_v17  ;;  %v2297_v6 = vld [vmem:[%s3241_s9 + $0x18] sm:$0xff] }
 0x801   :  { %1305 = vmatpush.bf16.msrb.mxu1 %v2297_v6 }
 0x802   :  { %v2430_v7 = vpop.eup %2429  ;;  %v954_v47 = vadd.f32 1e-05, %v952_v5 }
 0x803   :  { %v956_v32 = vmul.f32 %v2430_v7, %v953_v0  ;;  %vm962_vm13 = vweird.f32 %v2430_v7 }
 0x804   :  { %2431 = vrsqrt.f32 %v954_v47  ;;  %vm963_vm15 = vmor %vm961_vm14, %vm962_vm13  ;;  %vm971_vm3 = vweird.f32 %v954_v47 }
 0x805   :  { %v957_v9 = vmul.f32 %v2430_v7, %v956_v32 }
 0x807   :  { %v958_v10 = vmul.f32 0.5, %v957_v9 }
 0x809   :  { %v959_v11 = vsub.f32 1.5, %v958_v10 }
 0x80a   :  { %v2432_v12 = vpop.eup %2431 }
 0x80b   :  { %v966_v13 = vmul.f32 %v2432_v12, %v954_v47  ;;  %v960_v14 = vmul.f32 %v2430_v7, %v959_v11  ;;  %vm972_vm2 = vweird.f32 %v2432_v12 }
 0x80c   :  { %vm973_vm11 = vmor %vm971_vm3, %vm972_vm2  ;;  %vm1297_vm3 = vcmask 523264  }
 0x80d   :  { %v967_v52 = vmul.f32 %v2432_v12, %v966_v13  ;;  %v964_v16 = vsel %vm963_vm15, %v2430_v7, %v960_v14 }
 0x80e   :  { %v975_v63 = vmul.f32 %v964_v16, %v2827_v46 }
 0x80f   :  { %v968_v15 = vmul.f32 0.5, %v967_v52 }
 0x810   :  { %v980_v23 = vmul.f32 %v2369_v19, %v975_v63 }
 0x811   :  { %v969_v18 = vsub.f32 1.5, %v968_v15 }
 0x813   :  { %v970_v40 = vmul.f32 %v2432_v12, %v969_v18  ;;  %v2296_v18 = vld [vmem:[%s3241_s9 + $0x10] sm:$0xff] }
 0x814   :  { %1306 = vmatpush.bf16.msrb.mxu1 %v2296_v18 }
 0x815   :  { %v974_v21 = vsel %vm973_vm11, %v2432_v12, %v970_v40 }
 0x816   :  { %v976_v22 = vmul.f32 %v974_v21, %v2835_v55 }
 0x818   :  { %v981_v24 = vmul.f32 %v2369_v19, %v976_v22  ;;  %v2295_v22 = vld [vmem:[%s3241_s9 + $0x8] sm:$0xff] }
 0x819   :  { %1307 = vmatpush.bf16.msrb.mxu1 %v2295_v22 }
 0x81a   :  { %v2880_v25 = vpack.c.bf16 %v981_v24, %v980_v23 }
 0x81c   :  { %2087 = vmatmul.msk.bf16.vlgmr.msra.gmra.mxu2 %vm54_vm0, %v2880_v25  ;;  %2096 = vmatmul.msk.bf16.vlgmr.msra.gmra.mxu3 %vm54_vm0, %v2880_v25 }
 0x81d   :  { %2105 = vmatmul.msk.bf16.vlgmr.msrb.gmra.mxu0 %vm54_vm0, %v2880_v25  ;;  %1598 = vmatpush.bf16.msra.mxu2 %v2309_v20 }
 0x821   :  { %1599 = vmatpush.bf16.msra.mxu2 %v2308_v26 }
 0x82c   :  { %2137 = vmatmul.msk.bf16.vlgmr.msrb.gmra.mxu2 %vm54_vm0, %v2880_v25  ;;  %2150 = vmatmul.msk.bf16.vlgmr.msrb.gmra.mxu3 %vm54_vm0, %v2880_v25 }
 0x83c   :  { %2203 = vmatmul.msk.bf16.vlgmr.msra.gmra.mxu2 %vm54_vm0, %v2880_v25 }
 0x89f   :  { %v2897_v28 = vpop.f32.mrf.mxu2  ;;  %v2899_v29 = vpop.f32.mrf.mxu3 }
 0x8a0   :  { %v2902_v8 = vmul.f32 0.70710677, %v2899_v29  ;;  %v1017_v31 = vsel %vm1016_vm4, %v2897_v28, -inf }
 0x8a1   :  { %1018 = vmax.xlane.f32.xlu0 %v1017_v31 }
 0x8a2   :  { %v1178_v33 = vmul.f32 %v2902_v8, %v2902_v8 }
 0x8a4   :  { %v2908_v35 = vmin.f32 %v1178_v33, 16.0 }
 0x8a6   :  { %v1180_v36 = vmul.f32 2.1237322e-06, %v2908_v35  ;;  %v1191_v38 = vmul.f32 3.8918573e-05, %v2908_v35 }
 0x8a7   :  { %v2912_v39 = vpop.f32.mrf.mxu2  ;;  %v2914_v41 = vpop.f32.mrf.mxu3 }
 0x8a8   :  { %v1181_v42 = vadd.f32 0.00028619796, %v1180_v36  ;;  %v1192_v34 = vadd.f32 0.001143296, %v1191_v38  ;;  %v1020_v43 = vsel %vm1016_vm4, %v2912_v39, -inf }
 0x8a9   :  { %v2919_v45 = vmul.f32 0.70710677, %v2914_v41  ;;  %1021 = vmax.xlane.f32.xlu2 %v1020_v43 }
 0x8aa   :  { %v1182_v27 = vmul.f32 %v1181_v42, %v2908_v35  ;;  %v1193_v37 = vmul.f32 %v1192_v34, %v2908_v35 }
 0x8ab   :  { %v1218_v48 = vmul.f32 %v2919_v45, %v2919_v45 }
 0x8ac   :  { %v1194_v30 = vadd.f32 0.014752088, %v1193_v37  ;;  %v1183_v50 = vadd.f32 0.0036580483, %v1182_v27 }
 0x8ad   :  { %v2925_v49 = vmin.f32 %v1218_v48, 16.0 }
 0x8ae   :  { %v1195_v53 = vmul.f32 %v1194_v30, %v2908_v35  ;;  %v1184_v62 = vmul.f32 %v1183_v50, %v2908_v35  ;;  %v2294_v30 = vld [vmem:[%s3241_s9] sm:$0xff] }
 0x8af   :  { %v1220_v56 = vmul.f32 2.1237322e-06, %v2925_v49  ;;  %v1231_v57 = vmul.f32 3.8918573e-05, %v2925_v49  ;;  %v2930_v58 = vpop.f32.mrf.mxu2  ;;  %1308 = vmatpush.bf16.msrb.mxu1 %v2294_v30  ;;  %v2302_v30 = vld [vmem:[%s3241_s9 + $0x20] sm:$0xff] }
 0x8b0   :  { %v1196_v59 = vadd.f32 0.112945676, %v1195_v53  ;;  %v2933_v61 = vmul.f32 0.70710677, %v2930_v58  ;;  %v1185_v7 = vadd.f32 0.05243302, %v1184_v62 }
 0x8b1   :  { %v1221_v51 = vadd.f32 0.00028619796, %v1220_v56  ;;  %v1232_v60 = vadd.f32 0.001143296, %v1231_v57 }
 0x8b2   :  { %v1197_v54 = vmul.f32 %v1196_v59, %v2908_v35  ;;  %v1395_v1 = vmul.f32 %v2933_v61, %v2933_v61  ;;  %v1186_v16 = vmul.f32 %v1185_v7, %v2908_v35 }
 0x8b3   :  { %v1222_v44 = vmul.f32 %v1221_v51, %v2925_v49  ;;  %v1233_v0 = vmul.f32 %v1232_v60, %v2925_v49 }
 0x8b4   :  { %v1198_v2 = vadd.f32 0.4994258, %v1197_v54  ;;  %v2944_v5 = vmin.f32 %v1395_v1, 16.0  ;;  %v1187_v20 = vadd.f32 0.18741608, %v1186_v16 }
 0x8b5   :  { %v1223_v3 = vadd.f32 0.0036580483, %v1222_v44  ;;  %v1234_v4 = vadd.f32 0.014752088, %v1233_v0  ;;  %v2305_v44 = vld [vmem:[%s3241_s9 + $0x38] sm:$0xff] }
 0x8b6   :  { %v1199_v47 = vmul.f32 %v1198_v2, %v2908_v35  ;;  %v1397_v9 = vmul.f32 2.1237322e-06, %v2944_v5  ;;  %v1408_v13 = vmul.f32 3.8918573e-05, %v2944_v5  ;;  %v1188_v50 = vmul.f32 %v1187_v20, %v2908_v35  ;;  %1522 = vmatpush.bf16.msra.mxu0 %v2305_v44  ;;  %v2307_v20 = vld [vmem:[%s3239_s7 + $0x28] sm:$0xff] }
 0x8b7   :  { %v1235_v32 = vmul.f32 %v1234_v4, %v2925_v49  ;;  %v2949_v10 = vpop.f32.mrf.mxu2  ;;  %v1224_v12 = vmul.f32 %v1223_v3, %v2925_v49  ;;  %1567 = vmatpush.bf16.msra.mxu1 %v2307_v20 }
 0x8b8   :  { %v1200_v11 = vadd.f32 1.0, %v1199_v47  ;;  %v2954_v14 = vmul.f32 0.70710677, %v2949_v10  ;;  %v1398_v15 = vadd.f32 0.00028619796, %v1397_v9 }
 0x8b9   :  { %v1236_v52 = vadd.f32 0.112945676, %v1235_v32  ;;  %v1225_v19 = vadd.f32 0.05243302, %v1224_v12  ;;  %v1409_v63 = vadd.f32 0.001143296, %v1408_v13 }
 0x8ba   :  { %2433 = vrcp.f32 %v1200_v11  ;;  %v1435_v21 = vmul.f32 %v2954_v14, %v2954_v14  ;;  %v1399_v24 = vmul.f32 %v1398_v15, %v2944_v5  ;;  %v1210_v51 = vand.u32 2147483647, %v1200_v11  ;;  %v2304_v12 = vld [vmem:[%s3241_s9 + $0x30] sm:$0xff] }
 0x8bb   :  { %v1237_v40 = vmul.f32 %v1236_v52, %v2925_v49  ;;  %v1410_v26 = vmul.f32 %v1409_v63, %v2944_v5  ;;  %v1226_v38 = vmul.f32 %v1225_v19, %v2925_v49  ;;  %v1212_v60 = vand.u32 2147483648, %v1200_v11  ;;  %1523 = vmatpush.bf16.msra.mxu0 %v2304_v12 }
 0x8bc   :  { %v2968_v31 = vmin.f32 %v1435_v21, 16.0  ;;  %v1400_v48 = vadd.f32 0.0036580483, %v1399_v24  ;;  %v1189_v2 = vadd.f32 1.1283791, %v1188_v50  ;;  %vm1206_vm6 = vweird.f32 %v1200_v11  ;;  %v2303_v24 = vld [vmem:[%s3241_s9 + $0x28] sm:$0xff]  ;;  %v1169_v50 = vpop.f32.mrf.mxu0 }
 0x8bd   :  { %v1238_v23 = vadd.f32 0.4994258, %v1237_v40  ;;  %v1411_v42 = vadd.f32 0.014752088, %v1410_v26  ;;  %v1227_v62 = vadd.f32 0.18741608, %v1226_v38 }
 0x8be   :  { %v1437_v34 = vmul.f32 2.1237322e-06, %v2968_v31  ;;  %v1448_v43 = vmul.f32 3.8918573e-05, %v2968_v31  ;;  %v1401_v35 = vmul.f32 %v1400_v48, %v2944_v5  ;;  %v1213_v47 = vor.u32 1.1754944e-38, %v1212_v60 }
 0x8bf   :  { %v1239_v33 = vmul.f32 %v1238_v23, %v2925_v49  ;;  %v1412_v53 = vmul.f32 %v1411_v42, %v2944_v5  ;;  %v1228_v32 = vmul.f32 %v1227_v62, %v2925_v49  ;;  %vm1211_vm9 = vcmp.eq.f32.partialorder %v1210_v51, 8.507059e+37  ;;  %1524 = vmatpush.bf16.msra.mxu0 %v2303_v24 }
 0x8c0   :  { %v2434_v36 = vpop.eup %2433  ;;  %v1438_v56 = vadd.f32 0.00028619796, %v1437_v34  ;;  %v1449_v57 = vadd.f32 0.001143296, %v1448_v43  ;;  %v1402_v15 = vadd.f32 0.05243302, %v1401_v35  ;;  %v1190_v18 = vmul.f32 %v1189_v2, %v2902_v8 }
 0x8c1   :  { %v1202_v27 = vmul.f32 %v2434_v36, %v1200_v11  ;;  %v2974_v37 = vadd.f32 1.0, %v1239_v33  ;;  %v1413_v54 = vadd.f32 0.112945676, %v1412_v53  ;;  %vm1207_vm5 = vweird.f32 %v2434_v36 }
 0x8c2   :  { %v1450_v1 = vmul.f32 %v1449_v57, %v2968_v31  ;;  %v1439_v3 = vmul.f32 %v1438_v56, %v2968_v31  ;;  %vm1208_vm1 = vmor %vm1206_vm6, %vm1207_vm5  ;;  %v1229_v22 = vadd.f32 1.1283791, %v1228_v32  ;;  %v1403_v26 = vmul.f32 %v1402_v15, %v2944_v5 }
 0x8c3   :  { %v1203_v59 = vsub.f32 1.0, %v1202_v27  ;;  %2435 = vrcp.f32 %v2974_v37  ;;  %v1414_v6 = vmul.f32 %v1413_v54, %v2944_v5  ;;  %v1252_v8 = vand.u32 2147483648, %v2974_v37  ;;  %1525 = vmatpush.bf16.msra.mxu0 %v2302_v30 }
 0x8c4   :  { %v1451_v7 = vadd.f32 0.014752088, %v1450_v1  ;;  %v1440_v19 = vadd.f32 0.0036580483, %v1439_v3  ;;  %v1250_v42 = vand.u32 2147483647, %v2974_v37  ;;  %vm1246_vm7 = vweird.f32 %v2974_v37 }
 0x8c5   :  { %v1204_v0 = vmul.f32 %v2434_v36, %v1203_v59  ;;  %v1415_v9 = vadd.f32 0.4994258, %v1414_v6  ;;  %v1230_v53 = vmul.f32 %v1229_v22, %v2919_v45  ;;  %v1253_v56 = vor.u32 1.1754944e-38, %v1252_v8  ;;  %v2306_v59 = vld [vmem:[%s3239_s7 + $0x20] sm:$0xff]  ;;  %v2315_v45 = vld [vmem:[%s3239_s7 + $0x38] sm:$0xff] }
 0x8c6   :  { %v1452_v16 = vmul.f32 %v1451_v7, %v2968_v31  ;;  %v1441_v34 = vmul.f32 %v1440_v19, %v2968_v31  ;;  %v1404_v57 = vadd.f32 0.18741608, %v1403_v26  ;;  %vm1251_vm12 = vcmp.eq.f32.partialorder %v1250_v42, 8.507059e+37  ;;  %1568 = vmatpush.bf16.msra.mxu1 %v2306_v59  ;;  %v2314_v7 = vld [vmem:[%s3239_s7 + $0x30] sm:$0xff] }
 0x8c7   :  { %v1205_v4 = vadd.f32 %v2434_v36, %v1204_v0  ;;  %v1416_v49 = vmul.f32 %v1415_v9, %v2944_v5  ;;  %v1174_v2 = vmul.f32 0.5, %v2899_v29  ;;  %1782 = vmatpush.bf16.msrb.mxu0 %v2315_v45  ;;  %v1175_v32 = vmul.f32 0.5, %v2914_v41 }
 0x8c8   :  { %v1453_v63 = vadd.f32 0.112945676, %v1452_v16  ;;  %v1442_v60 = vadd.f32 0.05243302, %v1441_v34  ;;  %v1405_v1 = vmul.f32 %v1404_v57, %v2944_v5  ;;  %v1391_v59 = vmul.f32 0.5, %v2930_v58 }
 0x8c9   :  { %v2436_v13 = vpop.eup %2435  ;;  %v1209_v52 = vsel %vm1208_vm1, %v2434_v36, %v1205_v4  ;;  %v1417_v33 = vadd.f32 1.0, %v1416_v49 }
 0x8ca   :  { %v1214_v40 = vsel %vm1211_vm9, %v1213_v47, %v1209_v52  ;;  %v1242_v11 = vmul.f32 %v2436_v13, %v2974_v37  ;;  %v1454_v36 = vmul.f32 %v1453_v63, %v2968_v31  ;;  %vm1247_vm10 = vweird.f32 %v2436_v13 }
 0x8cb   :  { %v1215_v21 = vmul.f32 %v1214_v40, %v1190_v18  ;;  %2437 = vrcp.f32 %v1417_v33  ;;  %vm1248_vm8 = vmor %vm1246_vm7, %vm1247_vm10  ;;  %v1443_v4 = vmul.f32 %v1442_v60, %v2968_v31  ;;  %v1427_v52 = vand.u32 2147483647, %v1417_v33  ;;  %1783 = vmatpush.bf16.msrb.mxu0 %v2314_v7  ;;  %v1171_v18 = vpop.f32.mrf.mxu0 }
 0x8cc   :  { %v1243_v23 = vsub.f32 1.0, %v1242_v11  ;;  %v1455_v48 = vadd.f32 0.4994258, %v1454_v36  ;;  %v1429_v5 = vand.u32 2147483648, %v1417_v33  ;;  %vm1423_vm14 = vweird.f32 %v1417_v33 }
 0x8cd   :  { %v2106_v43 = vclamps-f32 %v1215_v21, 1.0  ;;  %v1444_v16 = vadd.f32 0.18741608, %v1443_v4  ;;  %vm1428_vm2 = vcmp.eq.f32.partialorder %v1427_v52, 8.507059e+37  ;;  %v2317_v21 = vld [vmem:[%s3240_s8 + $0x38] sm:$0xff] }
 0x8ce   :  { %v1244_v38 = vmul.f32 %v2436_v13, %v1243_v23  ;;  %v1456_v37 = vmul.f32 %v1455_v48, %v2968_v31  ;;  %v1430_v41 = vor.u32 1.1754944e-38, %v1429_v5 }
 0x8cf   :  { %v1258_v54 = vadd.f32 1.0, %v2106_v43  ;;  %v1445_v24 = vmul.f32 %v1444_v16, %v2968_v31  ;;  %v1386_v31 = vpop.f32.mrf.mxu3 }
 0x8d0   :  { %v1245_v27 = vadd.f32 %v2436_v13, %v1244_v38  ;;  %v1457_v0 = vadd.f32 1.0, %v1456_v37  ;;  %v1392_v37 = vmul.f32 0.5, %v2949_v10 }
 0x8d1   :  { %v2438_v35 = vpop.eup %2437  ;;  %v1260_v47 = vmul.f32 %v1258_v54, %v1174_v2  ;;  %v1446_v38 = vadd.f32 1.1283791, %v1445_v24 }
 0x8d2   :  { %v1249_v51 = vsel %vm1248_vm8, %v2436_v13, %v1245_v27  ;;  %v1419_v3 = vmul.f32 %v2438_v35, %v1417_v33  ;;  %2439 = vrcp.f32 %v1457_v0  ;;  %v1406_v13 = vadd.f32 1.1283791, %v1405_v1 }
 0x8d3   :  { %v1254_v62 = vsel %vm1251_vm12, %v1253_v56, %v1249_v51  ;;  %vm1424_vm13 = vweird.f32 %v2438_v35  ;;  %v1262_v40 = vmul.f32 %v1260_v47, %v1169_v50  ;;  %v1469_v33 = vand.u32 2147483648, %v1457_v0 }
 0x8d4   :  { %v1255_v44 = vmul.f32 %v1254_v62, %v1230_v53  ;;  %v1420_v12 = vsub.f32 1.0, %v1419_v3  ;;  %v1407_v63 = vmul.f32 %v1406_v13, %v2933_v61  ;;  %vm1425_vm15 = vmor %vm1423_vm14, %vm1424_vm13  ;;  %v2316_v61 = vld [vmem:[%s3240_s8 + $0x30] sm:$0xff]  ;;  %v1467_v34 = vand.u32 2147483647, %v1457_v0 }
 0x8d5   :  { %vm1463_vm5 = vweird.f32 %v1457_v0  ;;  %v1470_v48 = vor.u32 1.1754944e-38, %v1469_v33  ;;  %v1447_v30 = vmul.f32 %v1446_v38, %v2954_v14 }
 0x8d6   :  { %v2107_v6 = vclamps-f32 %v1255_v44, 1.0  ;;  %v1421_v29 = vmul.f32 %v2438_v35, %v1420_v12  ;;  %vm1468_vm1 = vcmp.eq.f32.partialorder %v1467_v34, 8.507059e+37 }
 0x8d7   :  { %v1388_v44 = vpop.f32.mrf.mxu3 }
 0x8d8   :  { %v1259_v9 = vadd.f32 1.0, %v2107_v6  ;;  %v1422_v19 = vadd.f32 %v2438_v35, %v1421_v29  ;;  %v2440_v49 = vpop.eup %2439 }
 0x8d9   :  { %v1459_v20 = vmul.f32 %v2440_v49, %v1457_v0  ;;  %vm1464_vm11 = vweird.f32 %v2440_v49 }
 0x8da   :  { %v1261_v15 = vmul.f32 %v1259_v9, %v1175_v32  ;;  %v1426_v23 = vsel %vm1425_vm15, %v2438_v35, %v1422_v19  ;;  %vm1465_vm6 = vmor %vm1463_vm5, %vm1464_vm11 }
 0x8db   :  { %v1431_v8 = vsel %vm1428_vm2, %v1430_v41, %v1426_v23  ;;  %v1460_v36 = vsub.f32 1.0, %v1459_v20 }
 0x8dc   :  { %v1263_v11 = vmul.f32 %v1261_v15, %v1171_v18  ;;  %v1432_v26 = vmul.f32 %v1431_v8, %v1407_v63 }
 0x8dd   :  { %v1461_v42 = vmul.f32 %v2440_v49, %v1460_v36 }
 0x8de   :  { %v1264_v22 = vpack.c.bf16 %v1263_v11, %v1262_v40  ;;  %v2151_v43 = vclamps-f32 %v1432_v26, 1.0 }
 0x8df   :  { %v1462_v27 = vadd.f32 %v2440_v49, %v1461_v42 }
 0x8e0   :  { %2124 = vmatmul.msk.bf16.vlgmr.msrb.gmra.mxu1 %vm1297_vm3, %v1264_v22  ;;  %v1475_v56 = vadd.f32 1.0, %v2151_v43 }
 0x8e1   :  { %1813 = vmatpush.bf16.msrb.mxu1 %v2317_v21  ;;  %v1466_v50 = vsel %vm1465_vm6, %v2440_v49, %v1462_v27 }
 0x8e2   :  { %v1471_v53 = vsel %vm1468_vm1, %v1470_v48, %v1466_v50  ;;  %v1477_v60 = vmul.f32 %v1475_v56, %v1391_v59  ;;  %v2313_v59 = vld [vmem:[%s3241_s9 + $0x58] sm:$0xff] }
 0x8e3   :  { %v1472_v57 = vmul.f32 %v1471_v53, %v1447_v30  ;;  %1737 = vmatpush.bf16.msra.mxu3 %v2313_v59 }
 0x8e4   :  { %v1479_v0 = vmul.f32 %v1477_v60, %v1386_v31 }
 0x8e5   :  { %1814 = vmatpush.bf16.msrb.mxu1 %v2316_v61  ;;  %v2152_v51 = vclamps-f32 %v1472_v57, 1.0 }
 0x8e7   :  { %v1476_v62 = vadd.f32 1.0, %v2152_v51 }
 0x8e9   :  { %v1478_v54 = vmul.f32 %v1476_v62, %v1392_v37 }
 0x8eb   :  { %v1480_v45 = vmul.f32 %v1478_v54, %v1388_v44 }
 0x8ed   :  { %v1481_v14 = vpack.c.bf16 %v1480_v45, %v1479_v0 }
 0x8ef   :  { %2177 = vmatmul.msk.bf16.vlgmr.msra.gmra.mxu0 %vm1297_vm3, %v1481_v14  ;;  %v2312_v14 = vld [vmem:[%s3241_s9 + $0x50] sm:$0xff] }
 0x8f0   :  { %2190 = vmatmul.msk.bf16.vlgmr.msra.gmra.mxu1 %vm54_vm0, %v2880_v25  ;;  %1738 = vmatpush.bf16.msra.mxu3 %v2312_v14 }
 0x8ff   :  { %2243 = vmatmul.msk.bf16.vlgmr.msrb.gmra.mxu0 %vm54_vm0, %v2880_v25 }
 0x900   :  { %2256 = vmatmul.msk.bf16.vlgmr.msrb.gmra.mxu1 %vm54_vm0, %v2880_v25 }
 0x914   :  { %v1019_v58 = vpop.xlane.xlu0 %1018 }
 0x915   :  { %v1023_v10 = vsub.f32 %v2897_v28, %v1019_v58 }
 0x917   :  { %v1025_v35 = vmul.f32 1.442695, %v1023_v10 }
 0x919   :  { %2441 = vpow2.f32 %v1025_v35 }
 0x91c   :  { %v1022_v1 = vpop.xlane.xlu2 %1021 }
 0x91d   :  { %v1024_v2 = vsub.f32 %v2912_v39, %v1022_v1 }
 0x91f   :  { %v3048_v6 = vpop.eup %2441  ;;  %v1027_v3 = vmul.f32 1.442695, %v1024_v2 }
 0x920   :  { %v1029_v4 = vsel %vm1016_vm4, %v3048_v6, 0.0 }
 0x921   :  { %2443 = vpow2.f32 %v1027_v3  ;;  %1030 = vadd.xlane.f32.xlu1 %v1029_v4 }
 0x927   :  { %v3052_v7 = vpop.eup %2443 }
 0x928   :  { %v1032_v25 = vsel %vm1016_vm4, %v3052_v7, 0.0 }
 0x929   :  { %1033 = vadd.xlane.f32.xlu0 %v1032_v25 }
 0x95d   :  { %v3056_v28 = vpop.f32.mrf.mxu1 }
 0x965   :  { %v3058_v47 = vpop.f32.mrf.mxu1 }
 0x96c   :  { %v3067_v12 = vpop.f32.mrf.mxu0 }
 0x96d   :  { %v3060_v32 = vpop.f32.mrf.mxu1 }
 0x96e   :  { %v3063_v39 = vmul.f32 0.70710677, %v3060_v32 }
 0x970   :  { %v1610_v9 = vmul.f32 %v3063_v39, %v3063_v39 }
 0x972   :  { %v1611_v13 = vmin.f32 %v1610_v9, 16.0 }
 0x974   :  { %v1612_v52 = vmul.f32 2.1237322e-06, %v1611_v13  ;;  %v1623_v5 = vmul.f32 3.8918573e-05, %v1611_v13  ;;  %v3074_v19 = vpop.f32.mrf.mxu0 }
 0x975   :  { %v3069_v15 = vpop.f32.mrf.mxu1 }
 0x976   :  { %v1613_v29 = vadd.f32 0.00028619796, %v1612_v52  ;;  %v1624_v16 = vadd.f32 0.001143296, %v1623_v5  ;;  %v3072_v18 = vmul.f32 0.70710677, %v3069_v15 }
 0x977   :  { %v2311_v52 = vld [vmem:[%s3241_s9 + $0x48] sm:$0xff] }
 0x978   :  { %v1614_v40 = vmul.f32 %v1613_v29, %v1611_v13  ;;  %v1625_v11 = vmul.f32 %v1624_v16, %v1611_v13  ;;  %v1650_v49 = vmul.f32 %v3072_v18, %v3072_v18  ;;  %1739 = vmatpush.bf16.msra.mxu3 %v2311_v52 }
 0x97a   :  { %v1615_v63 = vadd.f32 0.0036580483, %v1614_v40  ;;  %v1626_v41 = vadd.f32 0.014752088, %v1625_v11  ;;  %v1651_v21 = vmin.f32 %v1650_v49, 16.0 }
 0x97c   :  { %v1627_v22 = vmul.f32 %v1626_v41, %v1611_v13  ;;  %v1616_v23 = vmul.f32 %v1615_v63, %v1611_v13  ;;  %v1652_v24 = vmul.f32 2.1237322e-06, %v1651_v21  ;;  %v1663_v20 = vmul.f32 3.8918573e-05, %v1651_v21  ;;  %v3078_v34 = vpop.f32.mrf.mxu0 }
 0x97d   :  { %v3081_v48 = vmul.f32 0.70710677, %v3078_v34 }
 0x97e   :  { %v1628_v8 = vadd.f32 0.112945676, %v1627_v22  ;;  %v1653_v26 = vadd.f32 0.00028619796, %v1652_v24  ;;  %v1664_v36 = vadd.f32 0.001143296, %v1663_v20 }
 0x97f   :  { %v1617_v61 = vadd.f32 0.05243302, %v1616_v23  ;;  %v1825_v57 = vmul.f32 %v3081_v48, %v3081_v48  ;;  %v2310_v20 = vld [vmem:[%s3241_s9 + $0x40] sm:$0xff] }
 0x980   :  { %v1629_v33 = vmul.f32 %v1628_v8, %v1611_v13  ;;  %v1654_v38 = vmul.f32 %v1653_v26, %v1651_v21  ;;  %v1665_v42 = vmul.f32 %v1664_v36, %v1651_v21  ;;  %1740 = vmatpush.bf16.msra.mxu3 %v2310_v20 }
 0x981   :  { %v1618_v50 = vmul.f32 %v1617_v61, %v1611_v13  ;;  %v3090_v62 = vmin.f32 %v1825_v57, 16.0 }
 0x982   :  { %v1630_v43 = vadd.f32 0.4994258, %v1629_v33  ;;  %v1655_v27 = vadd.f32 0.0036580483, %v1654_v38  ;;  %v1666_v31 = vadd.f32 0.014752088, %v1665_v42 }
 0x983   :  { %v1619_v54 = vadd.f32 0.18741608, %v1618_v50  ;;  %v1827_v0 = vmul.f32 2.1237322e-06, %v3090_v62  ;;  %v1838_v10 = vmul.f32 3.8918573e-05, %v3090_v62 }
 0x984   :  { %v1631_v30 = vmul.f32 %v1630_v43, %v1611_v13  ;;  %v1656_v53 = vmul.f32 %v1655_v27, %v1651_v21  ;;  %v1667_v56 = vmul.f32 %v1666_v31, %v1651_v21  ;;  %v3094_v45 = vpop.f32.mrf.mxu0 }
 0x985   :  { %v3101_v35 = vmul.f32 0.70710677, %v3094_v45  ;;  %v1828_v2 = vadd.f32 0.00028619796, %v1827_v0  ;;  %v1839_v3 = vadd.f32 0.001143296, %v1838_v10  ;;  %v1620_v25 = vmul.f32 %v1619_v54, %v1611_v13 }
 0x986   :  { %v3088_v51 = vadd.f32 1.0, %v1631_v30  ;;  %v1657_v60 = vadd.f32 0.05243302, %v1656_v53  ;;  %v1668_v37 = vadd.f32 0.112945676, %v1667_v56 }
 0x987   :  { %v1865_v4 = vmul.f32 %v3101_v35, %v3101_v35  ;;  %v1829_v16 = vmul.f32 %v1828_v2, %v3090_v62  ;;  %v1840_v40 = vmul.f32 %v1839_v3, %v3090_v62  ;;  %v1621_v23 = vadd.f32 1.1283791, %v1620_v25  ;;  %v2320_v3 = vld [vmem:[%s3241_s9 + $0x70] sm:$0xff] }
 0x988   :  { %2445 = vrcp.f32 %v3088_v51  ;;  %v1669_v44 = vmul.f32 %v1668_v37, %v1651_v21  ;;  %v1658_v58 = vmul.f32 %v1657_v60, %v1651_v21  ;;  %v1642_v8 = vand.u32 2147483647, %v3088_v51 }
 0x989   :  { %v3110_v11 = vmin.f32 %v1865_v4, 16.0  ;;  %v1830_v41 = vadd.f32 0.0036580483, %v1829_v16  ;;  %v1841_v13 = vadd.f32 0.014752088, %v1840_v40  ;;  %v1644_v26 = vand.u32 2147483648, %v3088_v51 }
 0x98a   :  { %v1670_v1 = vadd.f32 0.4994258, %v1669_v44  ;;  %v1659_v29 = vadd.f32 0.18741608, %v1658_v58  ;;  %vm1638_vm10 = vweird.f32 %v3088_v51  ;;  %v1622_v60 = vmul.f32 %v1621_v23, %v3063_v39 }
 0x98b   :  { %v1867_v22 = vmul.f32 2.1237322e-06, %v3110_v11  ;;  %v1842_v33 = vmul.f32 %v1841_v13, %v3090_v62  ;;  %v1878_v42 = vmul.f32 3.8918573e-05, %v3110_v11  ;;  %v1831_v43 = vmul.f32 %v1830_v41, %v3090_v62 }
 0x98c   :  { %v1671_v9 = vmul.f32 %v1670_v1, %v1651_v21  ;;  %v1660_v36 = vmul.f32 %v1659_v29, %v1651_v21  ;;  %v2321_v21 = vld [vmem:[%s3241_s9 + $0x78] sm:$0xff]  ;;  %v1645_v56 = vor.u32 1.1754944e-38, %v1644_v26  ;;  %vm1643_vm8 = vcmp.eq.f32.partialorder %v1642_v8, 8.507059e+37  ;;  %v1601_v26 = vpop.f32.mrf.mxu2 }
 0x98d   :  { %v1868_v38 = vadd.f32 0.00028619796, %v1867_v22  ;;  %v1843_v27 = vadd.f32 0.112945676, %v1842_v33  ;;  %v1879_v53 = vadd.f32 0.001143296, %v1878_v42  ;;  %1952 = vmatpush.bf16.msrb.mxu2 %v2321_v21 }
 0x98e   :  { %v2446_v5 = vpop.eup %2445  ;;  %v3113_v63 = vadd.f32 1.0, %v1671_v9  ;;  %v1661_v57 = vadd.f32 1.1283791, %v1660_v36  ;;  %v1832_v14 = vadd.f32 0.05243302, %v1831_v43  ;;  %v1606_v4 = vmul.f32 0.5, %v3060_v32 }
 0x98f   :  { %v1634_v49 = vmul.f32 %v2446_v5, %v3088_v51  ;;  %vm1639_vm9 = vweird.f32 %v2446_v5  ;;  %v1869_v50 = vmul.f32 %v1868_v38, %v3110_v11  ;;  %v1844_v59 = vmul.f32 %v1843_v27, %v3090_v62 }
 0x990   :  { %2447 = vrcp.f32 %v3113_v63  ;;  %vm1640_vm7 = vmor %vm1638_vm10, %vm1639_vm9  ;;  %v1880_v54 = vmul.f32 %v1879_v53, %v3110_v11  ;;  %v1662_v39 = vmul.f32 %v1661_v57, %v3072_v18  ;;  %v1682_v9 = vand.u32 2147483647, %v3113_v63  ;;  %v2318_v53 = vld [vmem:[%s3241_s9 + $0x60] sm:$0xff] }
 0x991   :  { %v1635_v24 = vsub.f32 1.0, %v1634_v49  ;;  %v1870_v58 = vadd.f32 0.0036580483, %v1869_v50  ;;  %v1845_v1 = vadd.f32 0.4994258, %v1844_v59  ;;  %v1684_v29 = vand.u32 2147483648, %v3113_v63  ;;  %1953 = vmatpush.bf16.msrb.mxu2 %v2320_v3 }
 0x992   :  { %v1881_v2 = vadd.f32 0.014752088, %v1880_v54  ;;  %v1833_v41 = vmul.f32 %v1832_v14, %v3090_v62  ;;  %vm1678_vm13 = vweird.f32 %v3113_v63  ;;  %vm1683_vm14 = vcmp.eq.f32.partialorder %v1682_v9, 8.507059e+37 }
 0x993   :  { %v1636_v61 = vmul.f32 %v2446_v5, %v1635_v24  ;;  %v1846_v16 = vmul.f32 %v1845_v1, %v3090_v62  ;;  %v1871_v22 = vmul.f32 %v1870_v58, %v3110_v11  ;;  %v2319_v24 = vld [vmem:[%s3241_s9 + $0x68] sm:$0xff]  ;;  %v1685_v33 = vor.u32 1.1754944e-38, %v1684_v29 }
 0x994   :  { %v3126_v31 = vpop.xlane.xlu1 %1030  ;;  %v1882_v40 = vmul.f32 %v1881_v2, %v3110_v11  ;;  %v1834_v38 = vadd.f32 0.18741608, %v1833_v41  ;;  %v1607_v59 = vmul.f32 0.5, %v3069_v15 }
 0x995   :  { %v1637_v30 = vadd.f32 %v2446_v5, %v1636_v61  ;;  %2449 = vrcp.f32 %v3126_v31  ;;  %v3154_v13 = vadd.f32 1.0, %v1846_v16  ;;  %1954 = vmatpush.bf16.msrb.mxu2 %v2319_v24  ;;  %v1046_v43 = vand.u32 2147483648, %v3126_v31 }
 0x996   :  { %v2448_v51 = vpop.eup %2447  ;;  %v1883_v23 = vadd.f32 0.112945676, %v1882_v40  ;;  %vm1040_vm11 = vweird.f32 %v3126_v31  ;;  %v1835_v54 = vmul.f32 %v1834_v38, %v3090_v62 }
 0x997   :  { %v1641_v37 = vsel %vm1640_vm7, %v2446_v5, %v1637_v30  ;;  %v1674_v0 = vmul.f32 %v2448_v51, %v3113_v63  ;;  %vm1679_vm12 = vweird.f32 %v2448_v51  ;;  %v1044_v63 = vand.u32 2147483647, %v3126_v31 }
 0x998   :  { %v1646_v44 = vsel %vm1643_vm8, %v1645_v56, %v1641_v37  ;;  %vm1680_vm15 = vmor %vm1678_vm13, %vm1679_vm12  ;;  %v1884_v42 = vmul.f32 %v1883_v23, %v3110_v11  ;;  %v1872_v30 = vadd.f32 0.05243302, %v1871_v22  ;;  %v1857_v2 = vand.u32 2147483647, %v3154_v13 }
 0x999   :  { %v1647_v10 = vmul.f32 %v1646_v44, %v1622_v60  ;;  %v1675_v25 = vsub.f32 1.0, %v1674_v0  ;;  %1955 = vmatpush.bf16.msrb.mxu2 %v2318_v53  ;;  %v1047_v0 = vor.u32 1.1754944e-38, %v1046_v43  ;;  %vm1045_vm6 = vcmp.eq.f32.partialorder %v1044_v63, 8.507059e+37 }
 0x99a   :  { %v1885_v56 = vadd.f32 0.4994258, %v1884_v42  ;;  %v1873_v58 = vmul.f32 %v1872_v30, %v3110_v11  ;;  %v1859_v3 = vand.u32 2147483648, %v3154_v13  ;;  %v1836_v23 = vadd.f32 1.1283791, %v1835_v54 }
 0x99b   :  { %v3143_v52 = vpop.eup %2449  ;;  %v2204_v5 = vclamps-f32 %v1647_v10, 1.0  ;;  %v1676_v49 = vmul.f32 %v2448_v51, %v1675_v25  ;;  %vm1853_vm10 = vweird.f32 %v3154_v13  ;;  %vm1858_vm13 = vcmp.eq.f32.partialorder %v1857_v2, 8.507059e+37 }
 0x99c   :  { %v1036_v32 = vmul.f32 %v3143_v52, %v3126_v31  ;;  %v3151_v18 = vpop.xlane.xlu0 %1033  ;;  %vm1041_vm2 = vweird.f32 %v3143_v52  ;;  %v1886_v44 = vmul.f32 %v1885_v56, %v3110_v11 }
 0x99d   :  { %v1677_v20 = vadd.f32 %v2448_v51, %v1676_v49  ;;  %2451 = vrcp.f32 %v3151_v18  ;;  %v1690_v36 = vadd.f32 1.0, %v2204_v5  ;;  %vm1042_vm5 = vmor %vm1040_vm11, %vm1041_vm2  ;;  %v1059_v29 = vand.u32 2147483647, %v3151_v18 }
 0x99e   :  { %v1037_v8 = vsub.f32 1.0, %v1036_v32  ;;  %2453 = vrcp.f32 %v3154_v13  ;;  %v1061_v40 = vand.u32 2147483648, %v3151_v18  ;;  %vm1055_vm7 = vweird.f32 %v3151_v18 }
 0x99f   :  { %v1681_v61 = vsel %vm1680_vm15, %v2448_v51, %v1677_v20  ;;  %v1692_v57 = vmul.f32 %v1690_v36, %v1606_v4  ;;  %v1887_v4 = vadd.f32 1.0, %v1886_v44  ;;  %v1874_v20 = vadd.f32 0.18741608, %v1873_v58 }
 0x9a0   :  { %v1686_v27 = vsel %vm1683_vm14, %v1685_v33, %v1681_v61  ;;  %v1038_v50 = vmul.f32 %v3143_v52, %v1037_v8  ;;  %v1062_v36 = vor.u32 1.1754944e-38, %v1061_v40  ;;  %vm1060_vm14 = vcmp.eq.f32.partialorder %v1059_v29, 8.507059e+37 }
 0x9a1   :  { %v1687_v21 = vmul.f32 %v1686_v27, %v1662_v39  ;;  %v1694_v62 = vmul.f32 %v1692_v57, %v1601_v26  ;;  %2455 = vrcp.f32 %v1887_v4  ;;  %v1860_v26 = vor.u32 1.1754944e-38, %v1859_v3 }
 0x9a2   :  { %v1039_v51 = vadd.f32 %v3143_v52, %v1038_v50  ;;  %v1875_v42 = vmul.f32 %v1874_v20, %v3110_v11  ;;  %vm1893_vm2 = vweird.f32 %v1887_v4 }
 0x9a3   :  { %v2452_v60 = vpop.eup %2451  ;;  %v2205_v37 = vclamps-f32 %v1687_v21, 1.0  ;;  %v1899_v21 = vand.u32 2147483648, %v1887_v4 }
 0x9a4   :  { %v2454_v14 = vpop.eup %2453  ;;  %v1051_v10 = vmul.f32 %v2452_v60, %v3151_v18  ;;  %v1043_v15 = vsel %vm1042_vm5, %v3143_v52, %v1039_v51  ;;  %v1603_v52 = vpop.f32.mrf.mxu2  ;;  %vm1056_vm9 = vweird.f32 %v2452_v60  ;;  %v1837_v18 = vmul.f32 %v1836_v23, %v3081_v48 }
 0x9a5   :  { %v1691_v31 = vadd.f32 1.0, %v2205_v37  ;;  %v1849_v1 = vmul.f32 %v2454_v14, %v3154_v13  ;;  %v1048_v25 = vsel %vm1045_vm6, %v1047_v0, %v1043_v15  ;;  %vm1854_vm1 = vweird.f32 %v2454_v14  ;;  %vm1057_vm8 = vmor %vm1055_vm7, %vm1056_vm9  ;;  %v1816_v37 = vpop.f32.mrf.mxu1 }
 0x9a6   :  { %v1052_v39 = vsub.f32 1.0, %v1051_v10  ;;  %v3184_v16 = vmul.f32 %v3048_v6, %v1048_v25  ;;  %vm1855_vm12 = vmor %vm1853_vm10, %vm1854_vm1  ;;  %v1876_v56 = vadd.f32 1.1283791, %v1875_v42  ;;  %v1900_v48 = vor.u32 1.1754944e-38, %v1899_v21 }
 0x9a7   :  { %v1693_v9 = vmul.f32 %v1691_v31, %v1607_v59  ;;  %v1850_v5 = vsub.f32 1.0, %v1849_v1  ;;  %v2456_v61 = vpop.eup %2455  ;;  %v1897_v59 = vand.u32 2147483647, %v1887_v4  ;;  %v1822_v15 = vmul.f32 0.5, %v3094_v45 }
 0x9a8   :  { %v1053_v32 = vmul.f32 %v2452_v60, %v1052_v39  ;;  %v1068_v22 = vsel %vm1016_vm4, %v3184_v16, -inf  ;;  %v1889_v43 = vmul.f32 %v2456_v61, %v1887_v4  ;;  %vm1894_vm15 = vweird.f32 %v2456_v61 }
 0x9a9   :  { %v1695_v49 = vmul.f32 %v1693_v9, %v1603_v52  ;;  %v1851_v41 = vmul.f32 %v2454_v14, %v1850_v5  ;;  %1069 = vmax.xlane.f32.xlu2 %v1068_v22  ;;  %vm1895_vm11 = vmor %vm1893_vm2, %vm1894_vm15  ;;  %v1877_v11 = vmul.f32 %v1876_v56, %v3101_v35  ;;  %vm1898_vm5 = vcmp.eq.f32.partialorder %v1897_v59, 8.507059e+37 }
 0x9aa   :  { %v1054_v8 = vadd.f32 %v2452_v60, %v1053_v32  ;;  %v1890_v50 = vsub.f32 1.0, %v1889_v43  ;;  %v1065_v35 = vlaneseq }
 0x9ab   :  { %v1696_v6 = vpack.c.bf16 %v1695_v49, %v1694_v62  ;;  %v1852_v24 = vadd.f32 %v2454_v14, %v1851_v41 }
 0x9ac   :  { %v1058_v63 = vsel %vm1057_vm8, %v2452_v60, %v1054_v8  ;;  %v1891_v57 = vmul.f32 %v2456_v61, %v1890_v50  ;;  %v1066_v39 = vand.u32 127, %v1065_v35  ;;  %v2503_v50 = vmov 3  }
 0x9ad   :  { %v1856_v33 = vsel %vm1855_vm12, %v2454_v14, %v1852_v24  ;;  %2230 = vmatmul.msk.bf16.vlgmr.msra.gmra.mxu3 %vm1297_vm3, %v1696_v6  ;;  %v1063_v38 = vsel %vm1060_vm14, %v1062_v36, %v1058_v63  ;;  %v1821_v14 = vmul.f32 0.5, %v3078_v34  ;;  %v1818_v2 = vpop.f32.mrf.mxu1  ;;  %v2500_v36 = vmov 1  }
 0x9ae   :  { %v1861_v13 = vsel %vm1858_vm13, %v1860_v26, %v1856_v33  ;;  %v1064_v27 = vmul.f32 %v3052_v7, %v1063_v38  ;;  %v1892_v60 = vadd.f32 %v2456_v61, %v1891_v57  ;;  %v1067_v25 = vcvt.s32.f32 %v1066_v39  ;;  %2360 = vset.pattern.permute.xlu1 %v2500_v36 }
 0x9af   :  { %v1862_v30 = vmul.f32 %v1861_v13, %v1837_v18  ;;  %v2501_v33 = vmov 0  }
 0x9b0   :  { %v1071_v53 = vsel %vm1016_vm4, %v1064_v27, -inf  ;;  %v1896_v54 = vsel %vm1895_vm11, %v2456_v61, %v1892_v60  ;;  %2359 = vset.pattern.permute.xlu0 %v2501_v33  ;;  %2362 = vset.pattern.permute.xlu2 %v2501_v33 }
 0x9b1   :  { %1072 = vmax.xlane.f32.xlu1 %v1071_v53  ;;  %v2257_v51 = vclamps-f32 %v1862_v30, 1.0  ;;  %v1901_v7 = vsel %vm1898_vm5, %v1900_v48, %v1896_v54  ;;  %v2502_v30 = vmov 2  }
 0x9b2   :  { %v1902_v0 = vmul.f32 %v1901_v7, %v1877_v11 }
 0x9b3   :  { %v1905_v44 = vadd.f32 1.0, %v2257_v51 }
 0x9b4   :  { %v2258_v58 = vclamps-f32 %v1902_v0, 1.0 }
 0x9b5   :  { %v1907_v10 = vmul.f32 %v1905_v44, %v1821_v14 }
 0x9b6   :  { %v1906_v31 = vadd.f32 1.0, %v2258_v58 }
 0x9b7   :  { %v1909_v3 = vmul.f32 %v1907_v10, %v1816_v37 }
 0x9b8   :  { %v1908_v1 = vmul.f32 %v1906_v31, %v1822_v15 }
 0x9ba   :  { %v1910_v62 = vmul.f32 %v1908_v1, %v1818_v2 }
 0x9bc   :  { %v1911_v4 = vpack.c.bf16 %v1910_v62, %v1909_v3 }
 0x9be   :  { %2283 = vmatmul.msk.bf16.vlgmr.msrb.gmra.mxu2 %vm1297_vm3, %v1911_v4 }
 0xa1c   :  { %v1070_v9 = vpop.xlane.xlu2 %1069 }
 0xa1d   :  { %vm1074_vm6 = vcmp.ge.f32.partialorder %v3184_v16, %v1070_v9 }
 0xa1e   :  { %v1076_v5 = vsel %vm1074_vm6, %v1067_v25, 4.0 }
 0xa1f   :  { %v1078_v34 = vsel %vm1016_vm4, %v1076_v5, inf }
 0xa20   :  { %1079 = vmin.xlane.f32.xlu0 %v1078_v34 }
 0xa24   :  { %v1073_v29 = vpop.xlane.xlu1 %1072 }
 0xa25   :  { %vm1075_vm1 = vcmp.ge.f32.partialorder %v1064_v27, %v1073_v29 }
 0xa26   :  { %v1077_v45 = vsel %vm1075_vm1, %v1067_v25, 4.0 }
 0xa27   :  { %v1081_v52 = vsel %vm1016_vm4, %v1077_v45, inf }
 0xa28   :  { %1082 = vmin.xlane.f32.xlu2 %v1081_v52 }
 0xa30   :  { %v1742_v56 = vpop.f32.mrf.mxu3 }
 0xa38   :  { %v1744_v48 = vpop.f32.mrf.mxu3 }
 0xa41   :  { %v1957_v57 = vpop.f32.mrf.mxu2 }
 0xa49   :  { %v1959_v0 = vpop.f32.mrf.mxu2 }
 0xa93   :  { %v1080_v40 = vpop.xlane.xlu0 %1079 }
 0xa94   :  { %vm1084_vm9 = vcmp.eq.f32.partialorder %v1067_v25, %v1080_v40 }
 0xa95   :  { %v1090_v49 = vsel %vm1084_vm9, -1.0, %v3184_v16  ;;  %v1086_v61 = vsel %vm1084_vm9, %v1070_v9, 0.0 }
 0xa96   :  { %v1092_v41 = vsel %vm1016_vm4, %v1090_v49, -inf }
 0xa97   :  { %1093 = vmax.xlane.f32.xlu1 %v1092_v41 }
 0xa9b   :  { %v1083_v32 = vpop.xlane.xlu2 %1082 }
 0xa9c   :  { %vm1085_vm3 = vcmp.eq.f32.partialorder %v1067_v25, %v1083_v32 }
 0xa9d   :  { %v1091_v22 = vsel %vm1085_vm3, -1.0, %v1064_v27  ;;  %v1087_v42 = vsel %vm1085_vm3, %v1073_v29, 0.0 }
 0xa9e   :  { %v1095_v23 = vsel %vm1016_vm4, %v1091_v22, -inf }
 0xa9f   :  { %1096 = vmax.xlane.f32.xlu0 %v1095_v23 }
 0xb0a   :  { %v1094_v6 = vpop.xlane.xlu1 %1093 }
 0xb0b   :  { %vm1098_vm10 = vcmp.ge.f32.partialorder %v1090_v49, %v1094_v6 }
 0xb0c   :  { %v1100_v24 = vsel %vm1098_vm10, %v1067_v25, 4.0 }
 0xb0d   :  { %v1102_v20 = vsel %vm1016_vm4, %v1100_v24, inf  ;;  %v2370_v24 = vld [vmem:[%s3245_s13] ss:$0 sm:$0xff]  ;;  %s2024_s13 = sshll.u32 %s3246_s14, 4  ;;  %s2025_s13 = int_to_ptr.hbm [resolvable:$true] %s2024_s13 }
 0xb0e   :  { %1103 = vmin.xlane.f32.xlu2 %v1102_v20 }
 0xb12   :  { %v1097_v8 = vpop.xlane.xlu0 %1096 }
 0xb13   :  { %vm1099_vm7 = vcmp.ge.f32.partialorder %v1091_v22, %v1097_v8 }
 0xb14   :  { %v1101_v26 = vsel %vm1099_vm7, %v1067_v25, 4.0 }
 0xb15   :  { %v1105_v16 = vsel %vm1016_vm4, %v1101_v26, inf }
 0xb16   :  { %1106 = vmin.xlane.f32.xlu1 %v1105_v16 }
 0xb81   :  { %v1104_v63 = vpop.xlane.xlu2 %1103 }
 0xb82   :  { %vm1108_vm8 = vcmp.eq.f32.partialorder %v1067_v25, %v1104_v63 }
 0xb83   :  { %v1110_v13 = vsel %vm1108_vm8, %v1094_v6, 0.0 }
 0xb84   :  { %v1112_v38 = vadd.f32 %v1110_v13, %v1086_v61 }
 0xb86   :  { %1533 = vperm.xlu1 %2360, %v1112_v38   ;;  %1317 = vperm.xlu0 %2359, %v1112_v38  }
 0xb89   :  { %v1107_v18 = vpop.xlane.xlu1 %1106 }
 0xb8a   :  { %vm1109_vm12 = vcmp.eq.f32.partialorder %v1067_v25, %v1107_v18 }
 0xb8b   :  { %v1111_v43 = vsel %vm1109_vm12, %v1097_v8, 0.0 }
 0xb8c   :  { %v1113_v27 = vadd.f32 %v1111_v43, %v1087_v42 }
 0xb8e   :  { %1322 = vperm.xlu2 %2362, %v1113_v27   ;;  %2361 = vset.pattern.permute.xlu1 %v2502_v30 }
 0xb8f   :  { %2366 = vset.pattern.permute.xlu0 %v2503_v50  ;;  %1748 = vperm.xlu1 %2361, %v1112_v38  }
 0xb90   :  { %1967 = vperm.xlu0 %2366, %v1113_v27  }
 0xb96   :  { %2363 = vset.pattern.permute.xlu2 %v2500_v36 }
 0xb97   :  { %1537 = vperm.xlu2 %2363, %v1113_v27   ;;  %2365 = vset.pattern.permute.xlu1 %v2503_v50 }
 0xb98   :  { %1963 = vperm.xlu1 %2365, %v1112_v38  }
 0xb9f   :  { %2364 = vset.pattern.permute.xlu2 %v2502_v30 }
 0xba0   :  { %1752 = vperm.xlu2 %2364, %v1113_v27  }
 0xbe8   :  { %v1323_v53 = vpop.permute.xlu2 %1322 }
 0xbe9   :  { %v1326_v11 = vmul.f32 %v1323_v53, %v3058_v47 }
 0xbf1   :  { %v1538_v21 = vpop.permute.xlu2 %1537 }
 0xbf2   :  { %v1541_v37 = vmul.f32 %v1538_v21, %v3074_v19 }
 0xbf4   :  { %v1543_v7 = vadd.f32 %v1541_v37, %v1326_v11 }
 0xbf8   :  { %v1534_v59 = vpop.permute.xlu1 %1533  ;;  %v1318_v51 = vpop.permute.xlu0 %1317 }
 0xbf9   :  { %v1540_v15 = vmul.f32 %v1534_v59, %v3067_v12  ;;  %v1325_v31 = vmul.f32 %v1318_v51, %v3056_v28 }
 0xbfa   :  { %v1753_v60 = vpop.permute.xlu2 %1752 }
 0xbfb   :  { %v1756_v54 = vmul.f32 %v1753_v60, %v1744_v48  ;;  %v1542_v62 = vadd.f32 %v1540_v15, %v1325_v31 }
 0xbfd   :  { %v1758_v58 = vadd.f32 %v1756_v54, %v1543_v7 }
 0xc01   :  { %v1749_v44 = vpop.permute.xlu1 %1748 }
 0xc02   :  { %v1968_v14 = vpop.permute.xlu0 %1967  ;;  %v1755_v2 = vmul.f32 %v1749_v44, %v1742_v56 }
 0xc03   :  { %v1971_v10 = vmul.f32 %v1968_v14, %v1959_v0 }
 0xc04   :  { %v1757_v47 = vadd.f32 %v1755_v2, %v1542_v62 }
 0xc05   :  { %v1973_v1 = vadd.f32 %v1971_v10, %v1758_v58 }
 0xc07   :  { %v1976_v3 = vmul.f32 %v1973_v1, %v1973_v1 }
 0xc09   :  { %v1980_v19 = vsel %vm54_vm0, %v1976_v3, 0.0 }
 0xc0a   :  { %1981 = vadd.xlane.f32.xlu1 %v1980_v19  ;;  %v1964_v4 = vpop.permute.xlu1 %1963 }
 0xc0b   :  { %v1970_v35 = vmul.f32 %v1964_v4, %v1957_v57 }
 0xc0d   :  { %v1972_v39 = vadd.f32 %v1970_v35, %v1757_v47 }
 0xc0f   :  { %v1975_v25 = vmul.f32 %v1972_v39, %v1972_v39 }
 0xc11   :  { %v1977_v9 = vsel %vm54_vm0, %v1975_v25, 0.0 }
 0xc12   :  { %1978 = vadd.xlane.f32.xlu2 %v1977_v9 }
 0xc7d   :  { %v1982_v5 = vpop.xlane.xlu1 %1981 }
 0xc7e   :  { %v1984_v12 = vmul.f32 %v1982_v5, %v2614_v17 }
 0xc80   :  { %v1986_v34 = vadd.f32 1e-05, %v1984_v12 }
 0xc82   :  { %2457 = vrsqrt.f32 %v1986_v34  ;;  %vm2003_vm13 = vweird.f32 %v1986_v34 }
 0xc85   :  { %v1979_v28 = vpop.xlane.xlu2 %1978 }
 0xc86   :  { %v1983_v29 = vmul.f32 %v1979_v28, %v2614_v17 }
 0xc88   :  { %v2458_v45 = vpop.eup %2457  ;;  %v1985_v52 = vadd.f32 1e-05, %v1983_v29 }
 0xc89   :  { %v1998_v40 = vmul.f32 %v2458_v45, %v1986_v34  ;;  %vm2004_vm4 = vweird.f32 %v2458_v45 }
 0xc8a   :  { %2459 = vrsqrt.f32 %v1985_v52  ;;  %vm2005_vm14 = vmor %vm2003_vm13, %vm2004_vm4  ;;  %vm1993_vm2 = vweird.f32 %v1985_v52 }
 0xc8b   :  { %v1999_v49 = vmul.f32 %v2458_v45, %v1998_v40 }
 0xc8d   :  { %v2000_v41 = vmul.f32 0.5, %v1999_v49 }
 0xc8f   :  { %v2001_v32 = vsub.f32 1.5, %v2000_v41 }
 0xc90   :  { %v2460_v22 = vpop.eup %2459 }
 0xc91   :  { %v2002_v23 = vmul.f32 %v2458_v45, %v2001_v32  ;;  %v1988_v6 = vmul.f32 %v2460_v22, %v1985_v52  ;;  %vm1994_vm15 = vweird.f32 %v2460_v22 }
 0xc92   :  { %vm1995_vm11 = vmor %vm1993_vm2, %vm1994_vm15 }
 0xc93   :  { %v2006_v20 = vsel %vm2005_vm14, %v2458_v45, %v2002_v23  ;;  %v1989_v8 = vmul.f32 %v2460_v22, %v1988_v6 }
 0xc94   :  { %v2008_v17 = vmul.f32 %v2006_v20, %v1973_v1 }
 0xc95   :  { %v1990_v26 = vmul.f32 0.5, %v1989_v8 }
 0xc96   :  { %v2013_v16 = vmul.f32 %v2370_v24, %v2008_v17 }
 0xc97   :  { %v1991_v36 = vsub.f32 1.5, %v1990_v26 }
 0xc98   :  { %v2015_v33 = vadd.f32 %v2013_v16, %v2835_v55 }
 0xc99   :  { %v1992_v63 = vmul.f32 %v2460_v22, %v1991_v36 }
 0xc9a   :  { %2017 = vst.msk [vmem:[#allocation2 + $0x8] sm:$0xff] %vm54_vm0, %v2015_v33 }
 0xc9b   :  { %v1996_v61 = vsel %vm1995_vm11, %v2460_v22, %v1992_v63 }
 0xc9c   :  { %v2007_v13 = vmul.f32 %v1996_v61, %v1972_v39 }
 0xc9e   :  { %v2012_v38 = vmul.f32 %v2370_v24, %v2007_v13 }
 0xca0   :  { %v2014_v18 = vadd.f32 %v2012_v38, %v2827_v46 }
 0xca2   :  { %2016 = vst.msk [vmem:[#allocation2] sm:$0xff] %vm54_vm0, %v2014_v18 }
 0xca3   :  { %2030 = dma.vmem_to_hbm [thread:$0]  %s2023_s11, 256, %s2025_s13, [#allocation3], %s2505_s15, %s2505_s15, %s2489_s17  }
 0xca4   :  { %2487 = dma.done.wait [#allocation3], 256  }
 0xca5   :  { %2488 = vsyncadd [#allocation3], 4294967040 }
 0xca6   :  { %2035 = vsyncpa [#allocation3], 1 }

</bundles_post_ra>
